<compile_context>
chip_gen: v5e
topology: v5e:2x2
jax: 0.10.0
libtpu: 0.0.40
codegen_flags: <defaults>
</compile_context>

<pallas_src>
import math
import functools

import jax
import jax.numpy as jnp
from jax import lax
from jax.experimental import pallas as pl
from jax.experimental.pallas import tpu as pltpu

KSIZE = 3   # kernel size; padding = (KSIZE - 1) // 2 = 1
LANE = 128


def _round_up(x, m):
    return (x + m - 1) // m * m


def _pick_row_tile(H, W, N):
    """Row-tile height TH: a multiple of 8 that divides H, with TH*W ~<= 2048,
    preferring >= 4 total grid steps (2 TensorCores on v7x x 2 steps each).
    Falls back to TH=H when H has no suitable divisor (still a valid block)."""
    target = max(8, 2048 // max(W, 1))
    divs = [d for d in range(8, H + 1, 8) if H % d == 0]
    if not divs:
        return H
    cands = [d for d in divs if d <= target] or [min(divs)]
    good = [d for d in cands if N * (H // d) >= 4]
    return max(good) if good else max(cands)


def _rdb_conv_kernel(xpad_ref, w_ref, b_ref, o_ref, *, TH, W, Cin, G):
    """One (batch, row-tile) grid step.

    xpad_ref : (1, H+2, W+2, Cin) f32  zero-padded NHWC image (resident per batch)
    w_ref    : (9, Cin, G_pad)    bf16 per-tap weight matrices (lane-padded N)
    b_ref    : (1, G_pad)         f32  bias (lane-padded)
    o_ref    : (1, TH, W*(Cin+G))      lane-dense fused [x | relu(conv)] row tile
    """
    r = pl.program_id(1)
    row0 = pl.multiple_of(r * TH, TH)

    # (TH+2, W+2, Cin) window including the halo, read once from the resident
    # padded image; cast the conv-path copy to bf16 exactly once.
    x_win = xpad_ref[0, pl.ds(row0, TH + 2), :, :]
    x_bf = x_win.astype(w_ref.dtype)

    # 3x3 conv as 9 accumulating (TH*W, Cin) @ (Cin, G_pad) MXU matmuls
    # into a single f32 accumulator (no im2col patch concatenate).
    acc = None
    for dh in range(KSIZE):
        for dw in range(KSIZE):
            tap = x_bf[dh:dh + TH, dw:dw + W, :].reshape(TH * W, Cin)
            d = jnp.dot(tap, w_ref[dh * KSIZE + dw],
                        preferred_element_type=jnp.float32)
            acc = d if acc is None else acc + d

    acc = jnp.maximum(acc + b_ref[...], 0.0)              # bias + ReLU in f32
    # TODO(synk): in a fused multi-layer RDB, keep channels padded to 128 so
    # this lane-sparse slice/reshape (G < 128) and the padded-N MXU waste go away.
    conv = acc[:, :G].reshape(TH, W, G).astype(o_ref.dtype)

    # Passthrough channels: interior of the f32 window (bit-exact copy of x).
    x_rows = x_win[1:TH + 1, 1:W + 1, :].astype(o_ref.dtype)

    # Fused torch.cat((x, out), 1): interleave per pixel in vregs, then one
    # lane-dense (TH, W*(Cin+G)) store.
    o_ref[0] = jnp.concatenate([x_rows, conv], axis=-1).reshape(TH, W * (Cin + G))


def rdb_conv_forward(x_nchw, weight_oihw, bias, *, compute_dtype=jnp.bfloat16):
    """Equivalent of RDB_Conv.forward: cat([x, relu(conv3x3(x))], dim=1)."""
    N, Cin, H, W = x_nchw.shape
    G = weight_oihw.shape[0]
    G_pad = _round_up(G, LANE)
    TH = _pick_row_tile(H, W, N)
    n_row_tiles = H // TH

    # NCHW -> NHWC + 'SAME' zero padding, once in HBM (XLA fuses transpose+pad).
    x_pad = jnp.pad(jnp.transpose(x_nchw, (0, 2, 3, 1)),
                    ((0, 0), (1, 1), (1, 1), (0, 0)))

    # OIHW -> (kh*kw, Cin, G_pad) per-tap weight matrices, lane-padded, bf16.
    w_taps = jnp.transpose(weight_oihw, (2, 3, 1, 0)).reshape(KSIZE * KSIZE, Cin, G)
    w_taps = jnp.pad(w_taps, ((0, 0), (0, 0), (0, G_pad - G))).astype(compute_dtype)
    b_mat = jnp.pad(bias.reshape(1, G), ((0, 0), (0, G_pad - G))).astype(jnp.float32)

    kernel = functools.partial(_rdb_conv_kernel, TH=TH, W=W, Cin=Cin, G=G)

    out_flat = pl.pallas_call(
        kernel,
        out_shape=jax.ShapeDtypeStruct((N, H, W * (Cin + G)), x_nchw.dtype),
        grid_spec=pltpu.PrefetchScalarGridSpec(
            num_scalar_prefetch=0,
            grid=(N, n_row_tiles),
            in_specs=[
                # Padded image: same block index across the row-tile axis ->
                # resident in VMEM per batch; the kernel slices its own halo rows.
                # TODO(synk): for very large H*W*Cin on v7x (64 MiB VMEM), switch
                # this to memory_space=pl.ANY + manual double-buffered DMA of
                # TH+2 rows per step instead of whole-image residency.
                pl.BlockSpec((1, H + 2, W + 2, Cin), lambda n, r: (n, 0, 0, 0)),
                pl.BlockSpec((KSIZE * KSIZE, Cin, G_pad), lambda n, r: (0, 0, 0)),
                pl.BlockSpec((1, G_pad), lambda n, r: (0, 0)),
            ],
            out_specs=pl.BlockSpec((1, TH, W * (Cin + G)), lambda n, r: (n, r, 0)),
        ),
        compiler_params=pltpu.CompilerParams(
            dimension_semantics=("parallel", "parallel"),
            vmem_limit_bytes=48 * 1024 * 1024,  # safe on v7x (64 MiB), ample on v5e/v6e
        ),
    )(x_pad, w_taps, b_mat)

    # Lane-flattened slab -> NHWC -> NCHW once at the exit (PyTorch interface).
    return jnp.transpose(out_flat.reshape(N, H, W, Cin + G), (0, 3, 1, 2))


def _reference_forward(x_nchw, weight_oihw, bias):
    """Plain-JAX reference (lax conv, f32) for correctness check."""
    out = lax.conv_general_dilated(
        x_nchw, weight_oihw,
        window_strides=(1, 1), padding="SAME",
        dimension_numbers=("NCHW", "OIHW", "NCHW"),
    )
    out = jnp.maximum(out + bias[None, :, None, None], 0.0)
    return jnp.concatenate([x_nchw, out], axis=1)


if __name__ == "__main__":
    key = jax.random.PRNGKey(0)
    kx, kw, kb = jax.random.split(key, 3)

    N, Cin, H, W = 2, 4, 16, 16
    G = 8  # growRate

    x = jax.random.normal(kx, (N, Cin, H, W), dtype=jnp.float32)

    # Deterministic init mimicking nn.Conv2d defaults (uniform +-1/sqrt(fan_in)).
    fan_in = Cin * KSIZE * KSIZE
    bound = 1.0 / math.sqrt(fan_in)
    weight = jax.random.uniform(kw, (G, Cin, KSIZE, KSIZE), jnp.float32, -bound, bound)
    bias = jax.random.uniform(kb, (G,), jnp.float32, -bound, bound)

    out = jax.block_until_ready(rdb_conv_forward(x, weight, bias))
    assert out.shape == (N, Cin + G, H, W), out.shape

    ref = _reference_forward(x, weight, bias)
    # Passthrough channels must be exact; conv channels use bf16 MXU inputs
    # with f32 accumulation, so compare with a bf16-appropriate tolerance.
    assert jnp.array_equal(out[:, :Cin], x), "passthrough channels mismatch"
    assert jnp.allclose(out[:, Cin:], ref[:, Cin:], atol=5e-2, rtol=5e-2), \
        "conv channels mismatch vs reference"

    print("KERNEL_OK")
</pallas_src>

<mosaic_0001>
module attributes {stable_mosaic.version = 11 : i64} {
  func.func @_rdb_conv_kernel(%arg0: i32, %arg1: i32, %arg2: memref<1x18x18x4xf32, #tpu.memory_space<vmem>>, %arg3: memref<9x4x128xbf16, #tpu.memory_space<vmem>>, %arg4: memref<1x128xf32, #tpu.memory_space<vmem>>, %arg5: memref<1x8x192xf32, #tpu.memory_space<vmem>>) attributes {dimension_semantics = [#tpu.dimension_semantics<parallel>, #tpu.dimension_semantics<parallel>], iteration_bounds = array<i64: 2, 2>, scalar_prefetch = 0 : i64, scratch_operands = 0 : i64, tpu.core_type = #tpu.core_type<tc>, window_params = [{transform_indices = @transform_0, window_bounds = array<i64: 1, 18, 18, 4>}, {pipeline_mode = #tpu.pipeline_mode<synchronous>, transform_indices = @transform_1, window_bounds = array<i64: 9, 4, 128>}, {pipeline_mode = #tpu.pipeline_mode<synchronous>, transform_indices = @transform_2, window_bounds = array<i64: 1, 128>}, {transform_indices = @transform_3, window_bounds = array<i64: 1, 8, 192>}]} {
    %c8_i32 = arith.constant 8 : i32
    %0 = arith.muli %arg1, %c8_i32 : i32
    %1 = tpu.assume_multiple %0, 8 : i32
    %c0 = arith.constant 0 : index
    %2 = arith.index_cast %1 : i32 to index
    %c0_0 = arith.constant 0 : index
    %c0_1 = arith.constant 0 : index
    %3 = vector.load %arg2[%c0, %2, %c0_0, %c0_1] : memref<1x18x18x4xf32, #tpu.memory_space<vmem>>, vector<1x10x18x4xf32>
    %4 = vector.shape_cast %3 : vector<1x10x18x4xf32> to vector<10x18x4xf32>
    %5 = arith.truncf %4 : vector<10x18x4xf32> to vector<10x18x4xbf16>
    %6 = vector.extract_strided_slice %5 {offsets = [0, 0, 0], sizes = [8, 16, 4], strides = [1, 1, 1]} : vector<10x18x4xbf16> to vector<8x16x4xbf16>
    %7 = vector.shape_cast %6 : vector<8x16x4xbf16> to vector<128x4xbf16>
    %c0_2 = arith.constant 0 : index
    %c0_3 = arith.constant 0 : index
    %c0_4 = arith.constant 0 : index
    %8 = vector.load %arg3[%c0_2, %c0_3, %c0_4] : memref<9x4x128xbf16, #tpu.memory_space<vmem>>, vector<1x4x128xbf16>
    %9 = vector.shape_cast %8 : vector<1x4x128xbf16> to vector<4x128xbf16>
    %cst = arith.constant dense<0.000000e+00> : vector<128x128xf32>
    %10 = tpu.matmul %7, %9, %cst {dimension_numbers = #tpu.dot_dimension_numbers<[1], [0], [0], [1], [0, 0, 1, 1], [], []>} : vector<128x4xbf16>, vector<4x128xbf16>, vector<128x128xf32> -> vector<128x128xf32>
    %11 = vector.extract_strided_slice %5 {offsets = [0, 1, 0], sizes = [8, 16, 4], strides = [1, 1, 1]} : vector<10x18x4xbf16> to vector<8x16x4xbf16>
    %12 = vector.shape_cast %11 : vector<8x16x4xbf16> to vector<128x4xbf16>
    %c1 = arith.constant 1 : index
    %c0_5 = arith.constant 0 : index
    %c0_6 = arith.constant 0 : index
    %13 = vector.load %arg3[%c1, %c0_5, %c0_6] : memref<9x4x128xbf16, #tpu.memory_space<vmem>>, vector<1x4x128xbf16>
    %14 = vector.shape_cast %13 : vector<1x4x128xbf16> to vector<4x128xbf16>
    %cst_7 = arith.constant dense<0.000000e+00> : vector<128x128xf32>
    %15 = tpu.matmul %12, %14, %cst_7 {dimension_numbers = #tpu.dot_dimension_numbers<[1], [0], [0], [1], [0, 0, 1, 1], [], []>} : vector<128x4xbf16>, vector<4x128xbf16>, vector<128x128xf32> -> vector<128x128xf32>
    %16 = arith.addf %10, %15 : vector<128x128xf32>
    %17 = vector.extract_strided_slice %5 {offsets = [0, 2, 0], sizes = [8, 16, 4], strides = [1, 1, 1]} : vector<10x18x4xbf16> to vector<8x16x4xbf16>
    %18 = vector.shape_cast %17 : vector<8x16x4xbf16> to vector<128x4xbf16>
    %c2 = arith.constant 2 : index
    %c0_8 = arith.constant 0 : index
    %c0_9 = arith.constant 0 : index
    %19 = vector.load %arg3[%c2, %c0_8, %c0_9] : memref<9x4x128xbf16, #tpu.memory_space<vmem>>, vector<1x4x128xbf16>
    %20 = vector.shape_cast %19 : vector<1x4x128xbf16> to vector<4x128xbf16>
    %cst_10 = arith.constant dense<0.000000e+00> : vector<128x128xf32>
    %21 = tpu.matmul %18, %20, %cst_10 {dimension_numbers = #tpu.dot_dimension_numbers<[1], [0], [0], [1], [0, 0, 1, 1], [], []>} : vector<128x4xbf16>, vector<4x128xbf16>, vector<128x128xf32> -> vector<128x128xf32>
    %22 = arith.addf %16, %21 : vector<128x128xf32>
    %23 = vector.extract_strided_slice %5 {offsets = [1, 0, 0], sizes = [8, 16, 4], strides = [1, 1, 1]} : vector<10x18x4xbf16> to vector<8x16x4xbf16>
    %24 = vector.shape_cast %23 : vector<8x16x4xbf16> to vector<128x4xbf16>
    %c3 = arith.constant 3 : index
    %c0_11 = arith.constant 0 : index
    %c0_12 = arith.constant 0 : index
    %25 = vector.load %arg3[%c3, %c0_11, %c0_12] : memref<9x4x128xbf16, #tpu.memory_space<vmem>>, vector<1x4x128xbf16>
    %26 = vector.shape_cast %25 : vector<1x4x128xbf16> to vector<4x128xbf16>
    %cst_13 = arith.constant dense<0.000000e+00> : vector<128x128xf32>
    %27 = tpu.matmul %24, %26, %cst_13 {dimension_numbers = #tpu.dot_dimension_numbers<[1], [0], [0], [1], [0, 0, 1, 1], [], []>} : vector<128x4xbf16>, vector<4x128xbf16>, vector<128x128xf32> -> vector<128x128xf32>
    %28 = arith.addf %22, %27 : vector<128x128xf32>
    %29 = vector.extract_strided_slice %5 {offsets = [1, 1, 0], sizes = [8, 16, 4], strides = [1, 1, 1]} : vector<10x18x4xbf16> to vector<8x16x4xbf16>
    %30 = vector.shape_cast %29 : vector<8x16x4xbf16> to vector<128x4xbf16>
    %c4 = arith.constant 4 : index
    %c0_14 = arith.constant 0 : index
    %c0_15 = arith.constant 0 : index
    %31 = vector.load %arg3[%c4, %c0_14, %c0_15] : memref<9x4x128xbf16, #tpu.memory_space<vmem>>, vector<1x4x128xbf16>
    %32 = vector.shape_cast %31 : vector<1x4x128xbf16> to vector<4x128xbf16>
    %cst_16 = arith.constant dense<0.000000e+00> : vector<128x128xf32>
    %33 = tpu.matmul %30, %32, %cst_16 {dimension_numbers = #tpu.dot_dimension_numbers<[1], [0], [0], [1], [0, 0, 1, 1], [], []>} : vector<128x4xbf16>, vector<4x128xbf16>, vector<128x128xf32> -> vector<128x128xf32>
    %34 = arith.addf %28, %33 : vector<128x128xf32>
    %35 = vector.extract_strided_slice %5 {offsets = [1, 2, 0], sizes = [8, 16, 4], strides = [1, 1, 1]} : vector<10x18x4xbf16> to vector<8x16x4xbf16>
    %36 = vector.shape_cast %35 : vector<8x16x4xbf16> to vector<128x4xbf16>
    %c5 = arith.constant 5 : index
    %c0_17 = arith.constant 0 : index
    %c0_18 = arith.constant 0 : index
    %37 = vector.load %arg3[%c5, %c0_17, %c0_18] : memref<9x4x128xbf16, #tpu.memory_space<vmem>>, vector<1x4x128xbf16>
    %38 = vector.shape_cast %37 : vector<1x4x128xbf16> to vector<4x128xbf16>
    %cst_19 = arith.constant dense<0.000000e+00> : vector<128x128xf32>
    %39 = tpu.matmul %36, %38, %cst_19 {dimension_numbers = #tpu.dot_dimension_numbers<[1], [0], [0], [1], [0, 0, 1, 1], [], []>} : vector<128x4xbf16>, vector<4x128xbf16>, vector<128x128xf32> -> vector<128x128xf32>
    %40 = arith.addf %34, %39 : vector<128x128xf32>
    %41 = vector.extract_strided_slice %5 {offsets = [2, 0, 0], sizes = [8, 16, 4], strides = [1, 1, 1]} : vector<10x18x4xbf16> to vector<8x16x4xbf16>
    %42 = vector.shape_cast %41 : vector<8x16x4xbf16> to vector<128x4xbf16>
    %c6 = arith.constant 6 : index
    %c0_20 = arith.constant 0 : index
    %c0_21 = arith.constant 0 : index
    %43 = vector.load %arg3[%c6, %c0_20, %c0_21] : memref<9x4x128xbf16, #tpu.memory_space<vmem>>, vector<1x4x128xbf16>
    %44 = vector.shape_cast %43 : vector<1x4x128xbf16> to vector<4x128xbf16>
    %cst_22 = arith.constant dense<0.000000e+00> : vector<128x128xf32>
    %45 = tpu.matmul %42, %44, %cst_22 {dimension_numbers = #tpu.dot_dimension_numbers<[1], [0], [0], [1], [0, 0, 1, 1], [], []>} : vector<128x4xbf16>, vector<4x128xbf16>, vector<128x128xf32> -> vector<128x128xf32>
    %46 = arith.addf %40, %45 : vector<128x128xf32>
    %47 = vector.extract_strided_slice %5 {offsets = [2, 1, 0], sizes = [8, 16, 4], strides = [1, 1, 1]} : vector<10x18x4xbf16> to vector<8x16x4xbf16>
    %48 = vector.shape_cast %47 : vector<8x16x4xbf16> to vector<128x4xbf16>
    %c7 = arith.constant 7 : index
    %c0_23 = arith.constant 0 : index
    %c0_24 = arith.constant 0 : index
    %49 = vector.load %arg3[%c7, %c0_23, %c0_24] : memref<9x4x128xbf16, #tpu.memory_space<vmem>>, vector<1x4x128xbf16>
    %50 = vector.shape_cast %49 : vector<1x4x128xbf16> to vector<4x128xbf16>
    %cst_25 = arith.constant dense<0.000000e+00> : vector<128x128xf32>
    %51 = tpu.matmul %48, %50, %cst_25 {dimension_numbers = #tpu.dot_dimension_numbers<[1], [0], [0], [1], [0, 0, 1, 1], [], []>} : vector<128x4xbf16>, vector<4x128xbf16>, vector<128x128xf32> -> vector<128x128xf32>
    %52 = arith.addf %46, %51 : vector<128x128xf32>
    %53 = vector.extract_strided_slice %5 {offsets = [2, 2, 0], sizes = [8, 16, 4], strides = [1, 1, 1]} : vector<10x18x4xbf16> to vector<8x16x4xbf16>
    %54 = vector.shape_cast %53 : vector<8x16x4xbf16> to vector<128x4xbf16>
    %c8 = arith.constant 8 : index
    %c0_26 = arith.constant 0 : index
    %c0_27 = arith.constant 0 : index
    %55 = vector.load %arg3[%c8, %c0_26, %c0_27] : memref<9x4x128xbf16, #tpu.memory_space<vmem>>, vector<1x4x128xbf16>
    %56 = vector.shape_cast %55 : vector<1x4x128xbf16> to vector<4x128xbf16>
    %cst_28 = arith.constant dense<0.000000e+00> : vector<128x128xf32>
    %57 = tpu.matmul %54, %56, %cst_28 {dimension_numbers = #tpu.dot_dimension_numbers<[1], [0], [0], [1], [0, 0, 1, 1], [], []>} : vector<128x4xbf16>, vector<4x128xbf16>, vector<128x128xf32> -> vector<128x128xf32>
    %58 = arith.addf %52, %57 : vector<128x128xf32>
    %c0_29 = arith.constant 0 : index
    %c0_30 = arith.constant 0 : index
    %59 = vector.load %arg4[%c0_29, %c0_30] : memref<1x128xf32, #tpu.memory_space<vmem>>, vector<1x128xf32>
    %60 = vector.broadcast %59 : vector<1x128xf32> to vector<128x128xf32>
    %61 = arith.addf %58, %60 : vector<128x128xf32>
    %cst_31 = arith.constant 0.000000e+00 : f32
    %62 = vector.broadcast %cst_31 : f32 to vector<128x128xf32>
    %63 = arith.maximumf %61, %62 : vector<128x128xf32>
    %64 = vector.extract_strided_slice %63 {offsets = [0, 0], sizes = [128, 8], strides = [1, 1]} : vector<128x128xf32> to vector<128x8xf32>
    %65 = vector.shape_cast %64 : vector<128x8xf32> to vector<8x16x8xf32>
    %66 = vector.extract_strided_slice %4 {offsets = [1, 1, 0], sizes = [8, 16, 4], strides = [1, 1, 1]} : vector<10x18x4xf32> to vector<8x16x4xf32>
    %67 = tpu.concatenate %66, %65 in 2 : vector<8x16x4xf32>, vector<8x16x8xf32> -> vector<8x16x12xf32>
    %68 = vector.shape_cast %67 : vector<8x16x12xf32> to vector<8x192xf32>
    %c0_32 = arith.constant 0 : index
    %c0_33 = arith.constant 0 : index
    %c0_34 = arith.constant 0 : index
    %69 = vector.load %arg5[%c0_32, %c0_33, %c0_34] : memref<1x8x192xf32, #tpu.memory_space<vmem>>, vector<1x8x192xf32>
    %70 = vector.shape_cast %69 : vector<1x8x192xf32> to vector<8x192xf32>
    %71 = vector.shape_cast %68 : vector<8x192xf32> to vector<1x8x192xf32>
    tpu.vector_store %arg5[%c0_32, %c0_33, %c0_34], %71 {strides = array<i32>} : memref<1x8x192xf32, #tpu.memory_space<vmem>>, vector<1x8x192xf32>,
    return
  }
  func.func @transform_0(%arg0: i32, %arg1: i32) -> (i32, i32, i32, i32) {
    %c0_i32 = arith.constant 0 : i32
    %c0_i32_0 = arith.constant 0 : i32
    %c0_i32_1 = arith.constant 0 : i32
    %c0_i32_2 = arith.constant 0 : i32
    return %arg0, %c0_i32, %c0_i32_0, %c0_i32_1 : i32, i32, i32, i32
  }
  func.func @transform_1(%arg0: i32, %arg1: i32) -> (i32, i32, i32) {
    %c0_i32 = arith.constant 0 : i32
    %c0_i32_0 = arith.constant 0 : i32
    %c0_i32_1 = arith.constant 0 : i32
    %c0_i32_2 = arith.constant 0 : i32
    return %c0_i32, %c0_i32_0, %c0_i32_1 : i32, i32, i32
  }
  func.func @transform_2(%arg0: i32, %arg1: i32) -> (i32, i32) {
    %c0_i32 = arith.constant 0 : i32
    %c0_i32_0 = arith.constant 0 : i32
    %c0_i32_1 = arith.constant 0 : i32
    return %c0_i32, %c0_i32_0 : i32, i32
  }
  func.func @transform_3(%arg0: i32, %arg1: i32) -> (i32, i32, i32) {
    %c0_i32 = arith.constant 0 : i32
    %c0_i32_0 = arith.constant 0 : i32
    return %arg0, %arg1, %c0_i32 : i32, i32, i32
  }
}

</mosaic_0001>

<bundles_post_ra>
// kernel: tpu_custom_call.1
= control target key start
LH: loop header
LB: loop body
LE: loop exit
PB: predicated region body
PF: predicated region fallthrough
CT: control target
= control target key end

     0   :  { %8 = vsyncpa [#allocation3], 0  ;;  %s3401_s0 = inlined_call_operand.vmem [shape: f32[2,18,18,4], index: 0, kind: input, shape index: {}]   ;;  %s3402_s1 = inlined_call_operand.vmem [shape: bf16[9,4,128], index: 1, kind: input, shape index: {}]   ;;  %s3403_s2 = inlined_call_operand.vmem [shape: f32[1,128], index: 2, kind: input, shape index: {}]   ;;  %s3404_s3 = inlined_call_operand.hbm [shape: f32[2,16,192], index: 3, kind: output, shape index: {}]  }
   0x1   :  { %10 = vsyncpa [#allocation3 + $0x1], 0  ;;  %s2392_s12 = smov 0   ;;  %s2394_s13 = smov 0  }
   0x2   :  { %s2396_s14 = smov 0   ;;  %s2398_s15 = smov 0  }
   0x3   :  { %s2400_s16 = smov 0   ;;  %s2402_s17 = smov 0  }
   0x4   :  { %s2404_s18 = smov 0   ;;  %s2406_s19 = smov 0  }
   0x5 LB: > { %s2037_s20 = sadd.s32 4294967295, %s2353_s19   ;;  %s2038_s21 = sadd.s32 4294967294, %s2353_s19   ;;  %s2353_s19 = sphi %s2406_s19, %s16_s19   ;;  %s2349_s18 = sphi %s2404_s18, %s3417_s18   ;;  %s2345_s17 = sphi %s2402_s17, %s3416_s17   ;;  %s2341_s16 = sphi %s2400_s16, %s3415_s16   ;;  %s2337_s15 = sphi %s2398_s15, %s3414_s15   ;;  %s2333_s14 = sphi %s2396_s14, %s3413_s14   ;;  %s2329_s13 = sphi %s2394_s13, %s3412_s13   ;;  %s2325_s12 = sphi %s2392_s12, %s3411_s12  }
   0x6   : > { %s25_s22 = sadd.s32 1, %s2345_s17  ;;  %s28_s23 = sadd.s32 1, %s2349_s18 }
   0x7   : > { %p26_p0 = scmp.ge.s32.totalorder %s25_s22, 2  ;;  %p115_p1 = scmp.ne.s32.totalorder %s2333_s14, %s2329_s13 }
   0x8   : > { %p116_p2 = scmp.eq.s32.totalorder %s2037_s20, 3  ;;  %p121_p5 = scmp.ne.s32.totalorder %s2329_s13, %s2325_s12 }
   0x9   : > { %s3419_s22 = smov (%p26_p0, %s25_s22), 0  ;;  %s3421_s23 = smov (!%p26_p0, %s28_s23), %s2349_s18 }
   0xa   : > { %s101_s24 = ssub.s32 %s2345_s17, %s3419_s22  ;;  %p2443_p3 = por %p116_p2, %p115_p1 }
   0xb   : > { %p30_p4 = scmp.ge.s32.totalorder %s3421_s23, 2  ;;  %p122_p6 = scmp.eq.s32.totalorder %s2038_s21, 3 }
   0xc   : > { %p2041_p7 = scmp.ge.s32.totalorder %s2353_s19, 1  ;;  %p154_p9 = scmp.lt.s32.totalorder %s2353_s19, 5 }
   0xd   : > { %s3423_s23 = smov (%p30_p4, %s3421_s23), 0  ;;  %p2452_p8 = por %p122_p6, %p121_p5 }
   0xe   : > { %s100_s27 = ssub.s32 %s2349_s18, %s3423_s23  ;;  %s105_s28 = sadd.s32 1, %s2333_s14 }
   0xf   : > { %s102_s29 = sor.u32 %s101_s24, %s100_s27  ;;  %p155_p10 = pnand %p2041_p7, %p154_p9 }
  0x10   : > { %p103_p11 = scmp.eq.s32.totalorder %s102_s29, 0  ;;  %p178_p12 = scmp.lt.s32.totalorder (!%p155_p10), %s2341_s16, 1 }
  0x11   : > { %158 = sbr.rel (%p155_p10) target bundleno = 765 (0x2fd), region = 32  ;;  %s2355_s29 = smov (!%p155_p10), 4  }
  0x12   : > { %s2461_s30 = scalar_select %p103_p11, %s2333_s14, %s105_s28  }
  0x13   : > { %s2045_s9 = smul.u32 (!%p155_p10), 192, %s2337_s15  ;;  %s2358_s4 = smov (!%p155_p10), 84  }
  0x14   : > { %s2359_s5 = smov (!%p155_p10), 60   ;;  %s2362_s8 = smov (!%p155_p10), 48  }
  0x15   : > { %s2365_s11 = smov (!%p155_p10), 120   ;;  %s2366_s20 = smov (!%p155_p10), 28  }
  0x16   : > { %v2046_v0 = vld [vmem:[%s3402_s1 + $0x2] sm:$0x3]  ;;  %vm494_vm0 = vcmask 1041408   ;;  %s179_s6 = scalar_select %p178_p12, %s2341_s16, 1  ;;  %v2071_v2 = vld [vmem:[%s3402_s1 + $0x4] sm:$0x3] }
  0x17   : > { %v496_v1 = vsel %vm494_vm0, %v2046_v0, 0  ;;  %v781_v3 = vsel %vm494_vm0, %v2071_v2, 0  ;;  %v2080_v4 = vld [vmem:[%s3402_s1 + $0x6] sm:$0x3]  ;;  %v247_v5 = vld [vmem:[%s3402_s1] sm:$0x3] }
  0x18   : > { %2142 = vmatpush.bf16.msra.mxu1 %v496_v1  ;;  %2143 = vmatpush.bf16.msra.mxu2 %v496_v1  ;;  %s2145_s10 = smul.u32 432, %s179_s6  ;;  %v2089_v6 = vld [vmem:[%s3402_s1 + $0x8] sm:$0x3]  ;;  %v859_v7 = vsel %vm494_vm0, %v2080_v4, 0  ;;  %v612_v8 = vsel %vm494_vm0, %v247_v5, 0  ;;  %vm469_vm3 = vcmask 31744  }
  0x19   : > { %2144 = vmatpush.bf16.msra.mxu3 %v496_v1  ;;  %505 = vmatpush.bf16.msra.mxu0 %v496_v1  ;;  %v959_v9 = vsel %vm494_vm0, %v2089_v6, 0  ;;  %vm248_vm1 = vsmask.f32 3328  ;;  %vm249_vm2 = vsmask.f32 7440  ;;  %vm671_vm5 = vcmask 1042432  }
  0x1a   : > { %s182_s21 = scalar_lea.vmem %s3401_s0, %s2145_s10  ;;  %vm2524_vm4 = vmor %vm248_vm1, %vm249_vm2  ;;  %vm672_vm6 = vcmask 1046532   ;;  %vm1424_vm8 = vcmask 1040384   ;;  %vm1569_vm9 = vcmask 1046528   ;;  %vm1627_vm10 = vcmask 1047556   ;;  %s2361_s6 = smov 36  }
  0x1b   : > { %s2486_s7 = scalar_lea.vmem %s182_s21, %s2045_s9  ;;  %vm2667_vm7 = vmor %vm671_vm5, %vm672_vm6  ;;  %s2363_s9 = smov 72   ;;  %vm1911_vm11 = vcmask 97280   ;;  %vm1913_vm12 = vcmask 195584   ;;  %vm1915_vm13 = vcmask 293888   ;;  %vm1917_vm14 = vcmask 392192  }
  0x1c   : > { %790 = vmatpush.bf16.msrb.mxu2 %v781_v3  ;;  %v193_v10 = vld [vmem:[%s2486_s7 + $0x30] sm:$0xff]  ;;  %v194_v11 = vld [vmem:[%s2486_s7 + $0x38] sm:$0xff]  ;;  %v195_v12 = vld [vmem:[%s2486_s7 + $0x40] sm:$0x3]  ;;  %621 = vmatpush.bf16.msrb.mxu1 %v612_v8  ;;  %s2364_s10 = smov 24   ;;  %s2367_s21 = smov 16  }
  0x1d   : > { %868 = vmatpush.bf16.msrb.mxu3 %v859_v7  ;;  %v2494_v13 = vpack.c.bf16 %v193_v10, %v193_v10  ;;  %v2496_v14 = vpack.c.bf16 %v194_v11, %v194_v11  ;;  %v2498_v15 = vpack.c.bf16 %v195_v12, %v195_v12  ;;  %v199_v16 = vld [vmem:[%s2486_s7 + $0x60] sm:$0xff]  ;;  %v200_v17 = vld [vmem:[%s2486_s7 + $0x68] sm:$0xff]  ;;  %v201_v18 = vld [vmem:[%s2486_s7 + $0x70] sm:$0x3]  ;;  %968 = vmatpush.bf16.msrb.mxu0 %v959_v9  ;;  %s2368_s24 = smov 96   ;;  %s2369_s27 = smov 52  }
  0x1e   : > { %v2503_v19 = vpack.c.bf16 %v199_v16, %v199_v16  ;;  %v2505_v20 = vpack.c.bf16 %v200_v17, %v200_v17  ;;  %v2507_v21 = vpack.c.bf16 %v201_v18, %v201_v18  ;;  %v205_v30 = vld [vmem:[%s2486_s7 + $0x90] sm:$0xff]  ;;  %v206_v31 = vld [vmem:[%s2486_s7 + $0x98] sm:$0xff]  ;;  %v207_v36 = vld [vmem:[%s2486_s7 + $0xa0] sm:$0x3]  ;;  %s2370_s28 = smov 108   ;;  %vm1919_vm15 = vcmask 490496  }
  0x1f   : > { %v300_v22 = vshrl.u32 %v2494_v13, 16  ;;  %v303_v23 = vshll.u32 %v2494_v13, 16  ;;  %v309_v24 = vshll.u32 %v2496_v14, 16  ;;  %v313_v25 = vshrl.u32 %v2496_v14, 16  ;;  %v187_v62 = vld [vmem:[%s2486_s7] sm:$0xff]  ;;  %v188_v3 = vld [vmem:[%s2486_s7 + $0x8] sm:$0xff] }
  0x20   : > { %v319_v26 = vshll.u32 %v2498_v15, 16  ;;  %v348_v27 = vshrl.u32 %v2503_v19, 16  ;;  %v351_v28 = vshll.u32 %v2503_v19, 16  ;;  %v357_v29 = vshll.u32 %v2505_v20, 16  ;;  %v189_v4 = vld [vmem:[%s2486_s7 + $0x10] sm:$0x3] }
  0x21   : > { %v302_v32 = vrot.slane %v300_v22, 4  ;;  %v305_v33 = vrot.slane %v303_v23, 5  ;;  %v311_v34 = vrot.slane %v309_v24, 5  ;;  %v315_v35 = vrot.slane %v313_v25, 4 }
  0x22   : > { %v321_v37 = vrot.slane %v319_v26, 5  ;;  %v350_v38 = vrot.slane %v348_v27, 4  ;;  %v353_v39 = vrot.slane %v351_v28, 5  ;;  %v359_v40 = vrot.slane %v357_v29, 5 }
  0x23   : > { %v306_v41 = vor.u32 %v305_v33, %v302_v32  ;;  %v316_v42 = vor.u32 %v315_v35, %v311_v34  ;;  %v361_v43 = vshrl.u32 %v2505_v20, 16  ;;  %v367_v44 = vshll.u32 %v2507_v21, 16 }
  0x24   : > { %v354_v46 = vor.u32 %v353_v39, %v350_v38  ;;  %v2528_v47 = vpack.c.bf16 %v205_v30, %v205_v30  ;;  %v2530_v48 = vpack.c.bf16 %v206_v31, %v206_v31  ;;  %v2532_v49 = vpack.c.bf16 %v207_v36, %v207_v36  ;;  %v196_v31 = vld [vmem:[%s2486_s7 + $0x48] sm:$0xff]  ;;  %v197_v36 = vld [vmem:[%s2486_s7 + $0x50] sm:$0xff] }
  0x25   : > { %v307_v50 = vrot.slane %v306_v41, 4  ;;  %v317_v51 = vrot.slane %v316_v42, 4  ;;  %v363_v52 = vrot.slane %v361_v43, 4  ;;  %v369_v53 = vrot.slane %v367_v44, 5  ;;  %v198_v41 = vld [vmem:[%s2486_s7 + $0x58] sm:$0x3] }
  0x26   : > { %v355_v54 = vrot.slane %v354_v46, 4  ;;  %v396_v55 = vshrl.u32 %v2528_v47, 16  ;;  %v399_v56 = vshll.u32 %v2528_v47, 16  ;;  %v405_v57 = vshll.u32 %v2530_v48, 16  ;;  %v202_v42 = vld [vmem:[%s2486_s7 + $0x78] sm:$0xff] }
  0x27   : > { %v312_v58 = vsel %vm2524_vm4, %v307_v50, %v311_v34  ;;  %v322_v59 = vsel %vm2524_vm4, %v317_v51, %v321_v37  ;;  %v364_v60 = vor.u32 %v363_v52, %v359_v40  ;;  %v409_v61 = vshrl.u32 %v2530_v48, 16 }
  0x28   : > { %v449_v63 = vunpack.c.l.b16 %v312_v58  ;;  %v450_v0 = vunpack.c.l.b16 %v322_v59  ;;  %v360_v1 = vsel %vm2524_vm4, %v355_v54, %v359_v40  ;;  %v398_v2 = vrot.slane %v396_v55, 4  ;;  %v203_v58 = vld [vmem:[%s2486_s7 + $0x80] sm:$0xff] }
  0x29   : > { %v365_v5 = vrot.slane %v364_v60, 4  ;;  %v453_v6 = vunpack.c.l.b16 %v360_v1  ;;  %v401_v7 = vrot.slane %v399_v56, 5  ;;  %v407_v8 = vrot.slane %v405_v57, 5 }
  0x2a   : > { %v2547_v9 = vpack.c.b16 %v450_v0, %v449_v63  ;;  %v411_v10 = vrot.slane %v409_v61, 4  ;;  %v415_v11 = vshll.u32 %v2532_v49, 16  ;;  %v2550_v12 = vpack.c.bf16 %v187_v62, %v187_v62 }
  0x2b   : > { %v370_v16 = vsel %vm2524_vm4, %v365_v5, %v369_v53  ;;  %v402_v17 = vor.u32 %v401_v7, %v398_v2  ;;  %v2554_v18 = vpack.c.bf16 %v188_v3, %v188_v3  ;;  %v2556_v22 = vpack.c.bf16 %v189_v4, %v189_v4  ;;  %v204_v4 = vld [vmem:[%s2486_s7 + $0x88] sm:$0x3] }
  0x2c   : > { %2049 = vmatmul.msk.bf16.vlgmr.msra.gmra.mxu1 %vm469_vm3, %v2547_v9  ;;  %v454_v23 = vunpack.c.l.b16 %v370_v16  ;;  %v412_v24 = vor.u32 %v411_v10, %v407_v8  ;;  %v417_v25 = vrot.slane %v415_v11, 5  ;;  %v252_v26 = vshrl.u32 %v2550_v12, 16 }
  0x2d   : > { %v403_v27 = vrot.slane %v402_v17, 4  ;;  %v255_v28 = vshll.u32 %v2550_v12, 16  ;;  %v261_v29 = vshll.u32 %v2554_v18, 16  ;;  %v265_v30 = vshrl.u32 %v2554_v18, 16 }
  0x2e   : > { %v2565_v32 = vpack.c.b16 %v454_v23, %v453_v6  ;;  %v413_v33 = vrot.slane %v412_v24, 4  ;;  %v254_v34 = vrot.slane %v252_v26, 4  ;;  %v271_v35 = vshll.u32 %v2556_v22, 16 }
  0x2f   : > { %v408_v37 = vsel %vm2524_vm4, %v403_v27, %v407_v8  ;;  %v257_v38 = vrot.slane %v255_v28, 5  ;;  %v263_v39 = vrot.slane %v261_v29, 5  ;;  %v267_v40 = vrot.slane %v265_v30, 4  ;;  %v208_v27 = vld [vmem:[%s2486_s7 + $0xa8] sm:$0xff] }
  0x30   : > { %2051 = vmatmul.msk.bf16.vlgmr.msra.gmra.mxu2 %vm469_vm3, %v2565_v32  ;;  %v418_v43 = vsel %vm2524_vm4, %v413_v33, %v417_v25  ;;  %v457_v44 = vunpack.c.l.b16 %v408_v37  ;;  %v273_v46 = vrot.slane %v271_v35, 5  ;;  %v2577_v50 = vpack.c.bf16 %v196_v31, %v196_v31  ;;  %v209_v33 = vld [vmem:[%s2486_s7 + $0xb0] sm:$0xff] }
  0x31   : > { %v458_v51 = vunpack.c.l.b16 %v418_v43  ;;  %v258_v52 = vor.u32 %v257_v38, %v254_v34  ;;  %v268_v53 = vor.u32 %v267_v40, %v263_v39  ;;  %v2579_v54 = vpack.c.bf16 %v197_v36, %v197_v36  ;;  %v210_v38 = vld [vmem:[%s2486_s7 + $0xb8] sm:$0x3] }
  0x32   : > { %v2581_v55 = vpack.c.bf16 %v198_v41, %v198_v41  ;;  %v324_v56 = vshrl.u32 %v2577_v50, 16  ;;  %v327_v57 = vshll.u32 %v2577_v50, 16  ;;  %v2586_v59 = vpack.c.bf16 %v202_v42, %v202_v42 }
  0x33   : > { %v2588_v60 = vpack.c.b16 %v458_v51, %v457_v44  ;;  %v259_v61 = vrot.slane %v258_v52, 4  ;;  %v269_v62 = vrot.slane %v268_v53, 4  ;;  %v333_v63 = vshll.u32 %v2579_v54, 16 }
  0x34   : > { %v326_v0 = vrot.slane %v324_v56, 4  ;;  %v329_v1 = vrot.slane %v327_v57, 5  ;;  %v337_v2 = vshrl.u32 %v2579_v54, 16  ;;  %v343_v3 = vshll.u32 %v2581_v55, 16 }
  0x35   : > { %2053 = vmatmul.msk.bf16.vlgmr.msra.gmra.mxu3 %vm469_vm3, %v2588_v60  ;;  %v264_v5 = vsel %vm2524_vm4, %v259_v61, %v263_v39  ;;  %v274_v6 = vsel %vm2524_vm4, %v269_v62, %v273_v46  ;;  %v335_v7 = vrot.slane %v333_v63, 5  ;;  %v2600_v8 = vpack.c.bf16 %v203_v58, %v203_v58 }
  0x36   : > { %v445_v10 = vunpack.c.l.b16 %v264_v5  ;;  %v446_v11 = vunpack.c.l.b16 %v274_v6  ;;  %v330_v16 = vor.u32 %v329_v1, %v326_v0  ;;  %v339_v17 = vrot.slane %v337_v2, 4  ;;  %v191_v5 = vld [vmem:[%s2486_s7 + $0x20] sm:$0xff] }
  0x37   : > { %v345_v23 = vrot.slane %v343_v3, 5  ;;  %v2602_v24 = vpack.c.bf16 %v204_v4, %v204_v4  ;;  %v372_v25 = vshrl.u32 %v2586_v59, 16  ;;  %v375_v26 = vshll.u32 %v2586_v59, 16  ;;  %v190_v4 = vld [vmem:[%s2486_s7 + $0x18] sm:$0xff] }
  0x38   : > { %v461_v28 = vpack.c.b16 %v446_v11, %v445_v10  ;;  %v331_v29 = vrot.slane %v330_v16, 4  ;;  %v340_v30 = vor.u32 %v339_v17, %v335_v7  ;;  %v381_v31 = vshll.u32 %v2600_v8, 16  ;;  %v192_v16 = vld [vmem:[%s2486_s7 + $0x28] sm:$0x3] }
  0x39   : > { %v374_v34 = vrot.slane %v372_v25, 4  ;;  %v377_v35 = vrot.slane %v375_v26, 5  ;;  %v385_v36 = vshrl.u32 %v2600_v8, 16  ;;  %v391_v37 = vshll.u32 %v2602_v24, 16 }
  0x3a   : > { %2047 = vmatmul.msk.bf16.vlgmr.msra.gmra.mxu0 %vm469_vm3, %v461_v28  ;;  %v336_v39 = vsel %vm2524_vm4, %v331_v29, %v335_v7  ;;  %v341_v40 = vrot.slane %v340_v30, 4  ;;  %v383_v41 = vrot.slane %v381_v31, 5  ;;  %v2615_v42 = vpack.c.bf16 %v208_v27, %v208_v27 }
  0x3b   : > { %v451_v43 = vunpack.c.l.b16 %v336_v39  ;;  %v378_v44 = vor.u32 %v377_v35, %v374_v34  ;;  %v387_v46 = vrot.slane %v385_v36, 4  ;;  %v393_v51 = vrot.slane %v391_v37, 5 }
  0x3c   : > { %v346_v52 = vsel %vm2524_vm4, %v341_v40, %v345_v23  ;;  %v2619_v53 = vpack.c.bf16 %v209_v33, %v209_v33  ;;  %v2621_v56 = vpack.c.bf16 %v210_v38, %v210_v38  ;;  %v420_v57 = vshrl.u32 %v2615_v42, 16 }
  0x3d   : > { %v452_v58 = vunpack.c.l.b16 %v346_v52  ;;  %v379_v61 = vrot.slane %v378_v44, 4  ;;  %v388_v62 = vor.u32 %v387_v46, %v383_v41  ;;  %v423_v63 = vshll.u32 %v2615_v42, 16 }
  0x3e   : > { %v422_v0 = vrot.slane %v420_v57, 4  ;;  %v429_v1 = vshll.u32 %v2619_v53, 16  ;;  %v433_v2 = vshrl.u32 %v2619_v53, 16  ;;  %v439_v3 = vshll.u32 %v2621_v56, 16 }
  0x3f   : > { %v2630_v6 = vpack.c.b16 %v452_v58, %v451_v43  ;;  %v384_v7 = vsel %vm2524_vm4, %v379_v61, %v383_v41  ;;  %v389_v10 = vrot.slane %v388_v62, 4  ;;  %v425_v11 = vrot.slane %v423_v63, 5 }
  0x40   : > { %v455_v17 = vunpack.c.l.b16 %v384_v7  ;;  %v431_v23 = vrot.slane %v429_v1, 5  ;;  %v435_v25 = vrot.slane %v433_v2, 4  ;;  %v2639_v28 = vpack.c.bf16 %v190_v4, %v190_v4 }
  0x41   : > { %2050 = vmatmul.msk.bf16.gmra.mxu1 %vm469_vm3, %v2630_v6  ;;  %v394_v26 = vsel %vm2524_vm4, %v389_v10, %v393_v51  ;;  %v426_v27 = vor.u32 %v425_v11, %v422_v0  ;;  %v2641_v29 = vpack.c.bf16 %v191_v5, %v191_v5  ;;  %v441_v33 = vrot.slane %v439_v3, 5  ;;  %v2108_v5 = vld [vmem:[%s3402_s1 + $0xc] sm:$0x3] }
  0x42   : > { %v456_v30 = vunpack.c.l.b16 %v394_v26  ;;  %v436_v31 = vor.u32 %v435_v25, %v431_v23  ;;  %v2643_v34 = vpack.c.bf16 %v192_v16, %v192_v16  ;;  %v276_v36 = vshrl.u32 %v2639_v28, 16  ;;  %v2099_v26 = vld [vmem:[%s3402_s1 + $0xa] sm:$0x3] }
  0x43   : > { %v427_v35 = vrot.slane %v426_v27, 4  ;;  %v279_v37 = vshll.u32 %v2639_v28, 16  ;;  %v285_v38 = vshll.u32 %v2641_v29, 16  ;;  %v289_v41 = vshrl.u32 %v2641_v29, 16 }
  0x44   : > { %v2648_v39 = vpack.c.b16 %v456_v30, %v455_v17  ;;  %v437_v40 = vrot.slane %v436_v31, 4  ;;  %v295_v43 = vshll.u32 %v2643_v34, 16  ;;  %v278_v46 = vrot.slane %v276_v36, 4  ;;  %v2127_v30 = vld [vmem:[%s3402_s1 + $0x10] sm:$0x3] }
  0x45   : > { %v432_v44 = vsel %vm2524_vm4, %v427_v35, %v431_v23  ;;  %v281_v51 = vrot.slane %v279_v37, 5  ;;  %v287_v52 = vrot.slane %v285_v38, 5  ;;  %v291_v61 = vrot.slane %v289_v41, 4 }
  0x46   : > { %2052 = vmatmul.msk.bf16.gmra.mxu2 %vm469_vm3, %v2648_v39  ;;  %v442_v57 = vsel %vm2524_vm4, %v437_v40, %v441_v33  ;;  %v459_v58 = vunpack.c.l.b16 %v432_v44  ;;  %v563_v62 = vunpack.c.l.b16 %v2550_v12  ;;  %v297_v1 = vrot.slane %v295_v43, 5 }
  0x47   : > { %v460_v63 = vunpack.c.l.b16 %v442_v57  ;;  %v282_v0 = vor.u32 %v281_v51, %v278_v46  ;;  %v292_v2 = vor.u32 %v291_v61, %v287_v52  ;;  %v2063_v3 = vrot.slane %v2550_v12, 9  ;;  %v2117_v12 = vld [vmem:[%s3402_s1 + $0xe] sm:$0x3] }
  0x48   : > { %v676_v4 = vrot.slane %v2554_v18, 5  ;;  %v564_v11 = vunpack.c.l.b16 %v2554_v18  ;;  %v679_v17 = vrot.slane %v2556_v22, 5  ;;  %v1121_v22 = vsel %vm494_vm0, %v2108_v5, 0 }
  0x49   : > { %v2664_v7 = vpack.c.b16 %v460_v63, %v459_v58  ;;  %v283_v10 = vrot.slane %v282_v0, 4  ;;  %v293_v23 = vrot.slane %v292_v2, 4  ;;  %1130 = vmatpush.bf16.msra.mxu2 %v1121_v22  ;;  %v1221_v36 = vsel %vm494_vm0, %v2117_v12, 0 }
  0x4a   : > { %v678_v25 = vrot.slane %v676_v4, 4  ;;  %v677_v27 = vsel %vm2667_vm7, %v2063_v3, %v676_v4  ;;  %v579_v38 = vpack.c.b16 %v564_v11, %v563_v62  ;;  %1230 = vmatpush.bf16.msra.mxu3 %v1221_v36  ;;  %v1043_v40 = vsel %vm494_vm0, %v2099_v26, 0 }
  0x4b   : > { %2054 = vmatmul.msk.bf16.gmra.mxu3 %vm469_vm3, %v2664_v7  ;;  %v288_v18 = vsel %vm2524_vm4, %v283_v10, %v287_v52  ;;  %v298_v31 = vsel %vm2524_vm4, %v293_v23, %v297_v1  ;;  %v732_v41 = vunpack.c.l.b16 %v677_v27  ;;  %1052 = vmatpush.bf16.msra.mxu1 %v1043_v40  ;;  %v1305_v44 = vsel %vm494_vm0, %v2127_v30, 0 }
  0x4c   : > { %v447_v33 = vunpack.c.l.b16 %v288_v18  ;;  %v680_v35 = vsel %vm2667_vm7, %v678_v25, %v679_v17  ;;  %v448_v37 = vunpack.c.l.b16 %v298_v31  ;;  %1314 = vmatpush.bf16.msra.mxu0 %v1305_v44  ;;  %v567_v51 = vunpack.c.l.b16 %v2494_v13 }
  0x4d   : > { %v733_v43 = vunpack.c.l.b16 %v680_v35  ;;  %v568_v52 = vunpack.c.l.b16 %v2496_v14  ;;  %v2065_v58 = vrot.slane %v2494_v13, 9  ;;  %v690_v61 = vrot.slane %v2496_v14, 5 }
  0x4e   : > { %v462_v46 = vpack.c.b16 %v448_v37, %v447_v33  ;;  %v565_v63 = vunpack.c.l.b16 %v2639_v28  ;;  %v693_v0 = vrot.slane %v2498_v15, 5  ;;  %v566_v1 = vunpack.c.l.b16 %v2641_v29 }
  0x4f   : > { %v2699_v57 = vpack.c.b16 %v568_v52, %v567_v51  ;;  %v748_v62 = vpack.c.b16 %v733_v43, %v732_v41  ;;  %v683_v2 = vrot.slane %v2641_v29, 5  ;;  %v691_v3 = vsel %vm2667_vm7, %v2065_v58, %v690_v61 }
  0x50   : > { %2048 = vmatmul.msk.bf16.gmra.mxu0 %vm469_vm3, %v462_v46  ;;  %v692_v4 = vrot.slane %v690_v61, 4  ;;  %v736_v5 = vunpack.c.l.b16 %v691_v3  ;;  %v569_v14 = vunpack.c.l.b16 %v2577_v50  ;;  %v570_v11 = vunpack.c.l.b16 %v2579_v54 }
  0x51   : > { %2055 = vmatmul.msk.bf16.vlgmr.msrb.gmra.mxu1 %vm469_vm3, %v579_v38  ;;  %v580_v15 = vpack.c.b16 %v566_v1, %v565_v63  ;;  %v2064_v17 = vrot.slane %v2639_v28, 9  ;;  %v685_v12 = vrot.slane %v683_v2, 4  ;;  %v686_v29 = vrot.slane %v2643_v34, 5 }
  0x52   : > { %v694_v10 = vsel %vm2667_vm7, %v692_v4, %v693_v0  ;;  %v2718_v25 = vpack.c.b16 %v570_v11, %v569_v14  ;;  %v2066_v28 = vrot.slane %v2577_v50, 9  ;;  %v697_v34 = vrot.slane %v2579_v54, 5 }
  0x53   : > { %v737_v13 = vunpack.c.l.b16 %v694_v10  ;;  %v684_v26 = vsel %vm2667_vm7, %v2064_v17, %v683_v2  ;;  %v687_v18 = vsel %vm2667_vm7, %v685_v12, %v686_v29  ;;  %v700_v30 = vrot.slane %v2581_v55, 5 }
  0x54   : > { %v734_v27 = vunpack.c.l.b16 %v684_v26  ;;  %v735_v22 = vunpack.c.l.b16 %v687_v18  ;;  %v698_v33 = vsel %vm2667_vm7, %v2066_v28, %v697_v34  ;;  %v699_v35 = vrot.slane %v697_v34, 4 }
  0x55   : > { %v2716_v23 = vpack.c.b16 %v737_v13, %v736_v5  ;;  %v738_v36 = vunpack.c.l.b16 %v698_v33  ;;  %v571_v50 = vunpack.c.l.b16 %v2503_v19  ;;  %v572_v54 = vunpack.c.l.b16 %v2505_v20 }
  0x56   : > { %2072 = vmatmul.msk.bf16.vlgmr.msrb.gmra.mxu2 %vm469_vm3, %v748_v62  ;;  %v2730_v31 = vpack.c.b16 %v735_v22, %v734_v27  ;;  %v701_v37 = vsel %vm2667_vm7, %v699_v35, %v700_v30  ;;  %v704_v55 = vrot.slane %v2505_v20, 5  ;;  %v2067_v43 = vrot.slane %v2503_v19, 9  ;;  %v211_v27 = vld [vmem:[%s2486_s7 + $0xc0] sm:$0xff]  ;;  %v212_v22 = vld [vmem:[%s2486_s7 + $0xc8] sm:$0xff] }
  0x57   : > { %v739_v38 = vunpack.c.l.b16 %v701_v37  ;;  %v2759_v41 = vpack.c.b16 %v572_v54, %v571_v50  ;;  %v574_v61 = vunpack.c.l.b16 %v2600_v8  ;;  %v711_v62 = vrot.slane %v2600_v8, 5 }
  0x58   : > { %v706_v44 = vrot.slane %v704_v55, 4  ;;  %v705_v51 = vsel %vm2667_vm7, %v2067_v43, %v704_v55  ;;  %v2068_v0 = vrot.slane %v2586_v59, 9  ;;  %v714_v2 = vrot.slane %v2602_v24, 5 }
  0x59   : > { %v2738_v40 = vpack.c.b16 %v739_v38, %v738_v36  ;;  %v740_v20 = vunpack.c.l.b16 %v705_v51  ;;  %v713_v1 = vrot.slane %v711_v62, 4  ;;  %v575_v24 = vunpack.c.l.b16 %v2528_v47 }
  0x5a   : > { %v712_v3 = vsel %vm2667_vm7, %v2068_v0, %v711_v62  ;;  %v576_v10 = vunpack.c.l.b16 %v2530_v48  ;;  %v718_v13 = vrot.slane %v2530_v48, 5  ;;  %v2069_v11 = vrot.slane %v2528_v47, 9 }
  0x5b   : > { %2081 = vmatmul.msk.bf16.vlgmr.msrb.gmra.mxu3 %vm469_vm3, %v580_v15  ;;  %v715_v4 = vsel %vm2667_vm7, %v713_v1, %v714_v2  ;;  %v742_v8 = vunpack.c.l.b16 %v712_v3  ;;  %v721_v17 = vrot.slane %v2532_v49, 5  ;;  %v2819_v47 = vpack.c.bf16 %v211_v27, %v211_v27 }
  0x5c   : > { %v743_v5 = vunpack.c.l.b16 %v715_v4  ;;  %v2801_v14 = vpack.c.b16 %v576_v10, %v575_v24  ;;  %v719_v29 = vsel %vm2667_vm7, %v2069_v11, %v718_v13  ;;  %v2823_v28 = vpack.c.bf16 %v212_v22, %v212_v22 }
  0x5d   : > { %v744_v26 = vunpack.c.l.b16 %v719_v29  ;;  %v577_v34 = vunpack.c.l.b16 %v2615_v42  ;;  %v578_v30 = vunpack.c.l.b16 %v2619_v53  ;;  %v725_v33 = vrot.slane %v2619_v53, 5 }
  0x5e   : > { %v927_v37 = vshrl.u32 %v2819_v47, 16  ;;  %v930_v38 = vshll.u32 %v2819_v47, 16  ;;  %v936_v50 = vshll.u32 %v2823_v28, 16  ;;  %v940_v54 = vshrl.u32 %v2823_v28, 16 }
  0x5f   : > { %v2838_v55 = vpack.c.b16 %v578_v30, %v577_v34  ;;  %v2070_v43 = vrot.slane %v2615_v42, 9  ;;  %v727_v53 = vrot.slane %v725_v33, 4  ;;  %vm1921_vm0 = vcmask 588800  }
  0x60   : > { %2090 = vmatmul.msk.bf16.vlgmr.msrb.gmra.mxu0 %vm469_vm3, %v462_v46  ;;  %v707_v46 = vrot.slane %v2507_v21, 5  ;;  %v573_v21 = vunpack.c.l.b16 %v2586_v59  ;;  %v2794_v59 = vpack.c.b16 %v743_v5, %v742_v8  ;;  %v929_v51 = vrot.slane %v927_v37, 4 }
  0x61   : > { %2056 = vmatmul.msk.bf16.gmra.mxu1 %vm469_vm3, %v580_v15  ;;  %v720_v15 = vrot.slane %v718_v13, 4  ;;  %v942_v62 = vrot.slane %v940_v54, 4  ;;  %v726_v0 = vsel %vm2667_vm7, %v2070_v43, %v725_v33  ;;  %vm1932_vm1 = vcmask 130048  }
  0x62   : > { %v708_v52 = vsel %vm2667_vm7, %v706_v44, %v707_v46  ;;  %v2780_v63 = vpack.c.b16 %v574_v61, %v573_v21  ;;  %v728_v44 = vrot.slane %v2621_v56, 5  ;;  %v213_v46 = vld [vmem:[%s2486_s7 + $0xd0] sm:$0x3]  ;;  %v938_v61 = vrot.slane %v936_v50, 5 }
  0x63   : > { %v741_v58 = vunpack.c.l.b16 %v708_v52  ;;  %v722_v48 = vsel %vm2667_vm7, %v720_v15, %v721_v17  ;;  %v932_v52 = vrot.slane %v930_v38, 5  ;;  %v2845_v21 = vpack.c.bf16 %v213_v46, %v213_v46 }
  0x64   : > { %v745_v18 = vunpack.c.l.b16 %v722_v48  ;;  %v729_v42 = vsel %vm2667_vm7, %v727_v53, %v728_v44  ;;  %v746_v2 = vunpack.c.l.b16 %v726_v0  ;;  %v943_v4 = vor.u32 %v942_v62, %v938_v61 }
  0x65   : > { %v2773_v19 = vpack.c.b16 %v741_v58, %v740_v20  ;;  %v933_v56 = vor.u32 %v932_v52, %v929_v51  ;;  %v747_v3 = vunpack.c.l.b16 %v729_v42  ;;  %v946_v8 = vshll.u32 %v2845_v21, 16 }
  0x66   : > { %2073 = vmatmul.msk.bf16.gmra.mxu2 %vm469_vm3, %v2730_v31  ;;  %v2821_v49 = vpack.c.b16 %v745_v18, %v744_v26  ;;  %v944_v13 = vrot.slane %v943_v4, 4  ;;  %v852_v15 = vunpack.c.l.b16 %v2819_v47  ;;  %v853_v17 = vunpack.c.l.b16 %v2823_v28 }
  0x67   : > { %v2862_v24 = vpack.c.b16 %v747_v3, %v746_v2  ;;  %v934_v10 = vrot.slane %v933_v56, 4  ;;  %v948_v11 = vrot.slane %v946_v8, 5  ;;  %vm1923_vm2 = vcmask 687104  }
  0x68   : > { %v2876_v22 = vpack.c.b16 %v853_v17, %v852_v15  ;;  %vm1934_vm5 = vcmask 228352   ;;  %vm1927_vm6 = vcmask 883712  }
  0x69   : > { %v939_v26 = vsel %vm2524_vm4, %v934_v10, %v938_v61  ;;  %v949_v18 = vsel %vm2524_vm4, %v944_v13, %v948_v11 }
  0x6a   : > { %v952_v34 = vunpack.c.l.b16 %v939_v26  ;;  %v953_v30 = vunpack.c.l.b16 %v949_v18 }
  0x6b   : > { %2082 = vmatmul.msk.bf16.gmra.mxu3 %vm469_vm3, %v2699_v57 }
  0x6c   : > { %v2882_v37 = vpack.c.b16 %v953_v30, %v952_v34 }
  0x70   : > { %2091 = vmatmul.msk.bf16.gmra.mxu0 %vm469_vm3, %v2547_v9 }
  0x71   : > { %2057 = vmatmul.msk.bf16.gmra.mxu1 %vm469_vm3, %v2699_v57 }
  0x76   : > { %2074 = vmatmul.msk.bf16.gmra.mxu2 %vm469_vm3, %v2716_v23 }
  0x7b   : > { %2083 = vmatmul.msk.bf16.gmra.mxu3 %vm469_vm3, %v2718_v25 }
  0x80   : > { %2092 = vmatmul.msk.bf16.gmra.mxu0 %vm469_vm3, %v2630_v6 }
  0x81   : > { %2058 = vmatmul.msk.bf16.gmra.mxu1 %vm469_vm3, %v2718_v25 }
  0x86   : > { %2075 = vmatmul.msk.bf16.gmra.mxu2 %vm469_vm3, %v2738_v40 }
  0x8b   : > { %2084 = vmatmul.msk.bf16.gmra.mxu3 %vm469_vm3, %v2759_v41 }
  0x90   : > { %2093 = vmatmul.msk.bf16.gmra.mxu0 %vm469_vm3, %v2565_v32 }
  0x91   : > { %2059 = vmatmul.msk.bf16.gmra.mxu1 %vm469_vm3, %v2759_v41 }
  0x96   : > { %2076 = vmatmul.msk.bf16.gmra.mxu2 %vm469_vm3, %v2773_v19 }
  0x9b   : > { %2085 = vmatmul.msk.bf16.gmra.mxu3 %vm469_vm3, %v2780_v63 }
  0xa0   : > { %2094 = vmatmul.msk.bf16.gmra.mxu0 %vm469_vm3, %v2648_v39 }
  0xa1   : > { %2060 = vmatmul.msk.bf16.gmra.mxu1 %vm469_vm3, %v2780_v63 }
  0xa6   : > { %2077 = vmatmul.msk.bf16.gmra.mxu2 %vm469_vm3, %v2794_v59 }
  0xa9   : > { %v2805_v12 = vpop.f32.mrf.mxu1 }
  0xab   : > { %2086 = vmatmul.msk.bf16.gmra.mxu3 %vm469_vm3, %v2801_v14 }
  0xb0   : > { %2095 = vmatmul.msk.bf16.gmra.mxu0 %vm469_vm3, %v2588_v60 }
  0xb1   : > { %2061 = vmatmul.msk.bf16.gmra.mxu1 %vm469_vm3, %v2801_v14  ;;  %v2828_v35 = vpop.f32.mrf.mxu1 }
  0xb3   : > { %v2830_v36 = vpop.f32.mrf.mxu2 }
  0xb6   : > { %2078 = vmatmul.msk.bf16.gmra.mxu2 %vm469_vm3, %v2821_v49 }
  0xb7   : > { %v507_v20 = vpop.f32.mrf.mxu0 }
  0xb8   : > { %v2843_v58 = vpop.f32.mrf.mxu3 }
  0xbb   : > { %2087 = vmatmul.msk.bf16.gmra.mxu3 %vm469_vm3, %v2838_v55  ;;  %v2856_v5 = vpop.f32.mrf.mxu2 }
  0xbe   : > { %v2853_v1 = vpop.f32.mrf.mxu1 }
  0xbf   : > { %v509_v29 = vpop.f32.mrf.mxu0 }
  0xc0   : > { %2096 = vmatmul.msk.bf16.gmra.mxu0 %vm469_vm3, %v2664_v7  ;;  %v2866_v48 = vpop.f32.mrf.mxu3 }
  0xc1   : > { %2062 = vmatmul.msk.bf16.gmra.mxu1 %vm469_vm3, %v2838_v55 }
  0xc6   : > { %2079 = vmatmul.msk.bf16.gmra.mxu2 %vm469_vm3, %v2862_v24  ;;  %v2874_v27 = vpop.f32.mrf.mxu1 }
  0xc9   : > { %v2878_v33 = vpop.f32.mrf.mxu2 }
  0xcb   : > { %2088 = vmatmul.msk.bf16.gmra.mxu3 %vm469_vm3, %v2876_v22 }
  0xcd   : > { %v512_v38 = vpop.f32.mrf.mxu0 }
  0xce   : > { %v2884_v50 = vpop.f32.mrf.mxu3  ;;  %v623_v54 = vpop.f32.mrf.mxu1 }
  0xcf   : > { %v624_v43 = vadd.f32 %v623_v54, %v507_v20 }
  0xd0   : > { %2097 = vmatmul.msk.bf16.gmra.mxu0 %vm469_vm3, %v2882_v37 }
  0xd1   : > { %v2888_v53 = vpop.f32.mrf.mxu2  ;;  %2100 = vmatmul.msk.bf16.vlgmr.msra.gmra.mxu1 %vm469_vm3, %v2730_v31 }
  0xd5   : > { %v514_v44 = vpop.f32.mrf.mxu0 }
  0xd6   : > { %v2892_v46 = vpop.f32.mrf.mxu3  ;;  %2109 = vmatmul.msk.bf16.vlgmr.msra.gmra.mxu2 %vm469_vm3, %v2699_v57  ;;  %v625_v51 = vpop.f32.mrf.mxu1 }
  0xd7   : > { %v626_v52 = vadd.f32 %v625_v51, %v509_v29 }
  0xd9   : > { %v792_v61 = vpop.f32.mrf.mxu2 }
  0xda   : > { %v832_v62 = vadd.f32 %v792_v61, %v624_v43 }
  0xdb   : > { %2118 = vmatmul.msk.bf16.vlgmr.msra.gmra.mxu3 %vm469_vm3, %v2547_v9 }
  0xdd   : > { %v970_v20 = vpop.f32.mrf.mxu0 }
  0xde   : > { %v870_v0 = vpop.f32.mrf.mxu3  ;;  %v628_v56 = vpop.f32.mrf.mxu1 }
  0xdf   : > { %v910_v42 = vadd.f32 %v870_v0, %v832_v62  ;;  %v629_v2 = vadd.f32 %v628_v56, %v512_v38 }
  0xe0   : > { %2128 = vmatmul.msk.bf16.vlgmr.msra.gmra.mxu0 %vm469_vm3, %v2716_v23 }
  0xe1   : > { %v794_v31 = vpop.f32.mrf.mxu2  ;;  %2101 = vmatmul.msk.bf16.gmra.mxu1 %vm469_vm3, %v2716_v23  ;;  %v2902_v57 = vadd.f32 %v970_v20, %v910_v42 }
  0xe2   : > { %v833_v3 = vadd.f32 %v794_v31, %v626_v52 }
  0xe5   : > { %v972_v4 = vpop.f32.mrf.mxu0 }
  0xe6   : > { %v872_v8 = vpop.f32.mrf.mxu3  ;;  %2110 = vmatmul.msk.bf16.gmra.mxu2 %vm469_vm3, %v2718_v25  ;;  %v630_v10 = vpop.f32.mrf.mxu1 }
  0xe7   : > { %v911_v9 = vadd.f32 %v872_v8, %v833_v3  ;;  %v631_v13 = vadd.f32 %v630_v10, %v514_v44 }
  0xe9   : > { %v797_v11 = vpop.f32.mrf.mxu2  ;;  %v2906_v15 = vadd.f32 %v972_v4, %v911_v9 }
  0xea   : > { %v834_v17 = vadd.f32 %v797_v11, %v629_v2 }
  0xeb   : > { %2119 = vmatmul.msk.bf16.gmra.mxu3 %vm469_vm3, %v2630_v6 }
  0xed   : > { %v975_v29 = vpop.f32.mrf.mxu0 }
  0xee   : > { %v875_v23 = vpop.f32.mrf.mxu3  ;;  %v633_v18 = vpop.f32.mrf.mxu1 }
  0xef   : > { %v912_v26 = vadd.f32 %v875_v23, %v834_v17  ;;  %v634_v34 = vadd.f32 %v633_v18, %v2805_v12 }
  0xf0   : > { %2129 = vmatmul.msk.bf16.gmra.mxu0 %vm469_vm3, %v2738_v40 }
  0xf1   : > { %v799_v25 = vpop.f32.mrf.mxu2  ;;  %2102 = vmatmul.msk.bf16.gmra.mxu1 %vm469_vm3, %v2738_v40  ;;  %v2915_v30 = vadd.f32 %v975_v29, %v912_v26 }
  0xf2   : > { %v835_v38 = vadd.f32 %v799_v25, %v631_v13 }
  0xf5   : > { %v977_v54 = vpop.f32.mrf.mxu0 }
  0xf6   : > { %v877_v43 = vpop.f32.mrf.mxu3  ;;  %2111 = vmatmul.msk.bf16.gmra.mxu2 %vm469_vm3, %v2759_v41  ;;  %v635_v44 = vpop.f32.mrf.mxu1 }
  0xf7   : > { %v913_v6 = vadd.f32 %v877_v43, %v835_v38  ;;  %v636_v51 = vadd.f32 %v635_v44, %v2828_v35 }
  0xf9   : > { %v802_v12 = vpop.f32.mrf.mxu2  ;;  %v2920_v52 = vadd.f32 %v977_v54, %v913_v6 }
  0xfa   : > { %v836_v61 = vadd.f32 %v802_v12, %v634_v34 }
  0xfb   : > { %2120 = vmatmul.msk.bf16.gmra.mxu3 %vm469_vm3, %v2565_v32 }
  0xfd   : > { %v980_v40 = vpop.f32.mrf.mxu0 }
  0xfe   : > { %v880_v62 = vpop.f32.mrf.mxu3  ;;  %v638_v0 = vpop.f32.mrf.mxu1 }
  0xff   : > { %v914_v20 = vadd.f32 %v880_v62, %v836_v61  ;;  %v639_v42 = vadd.f32 %v638_v0, %v2853_v1  ;;  %v215_v0 = vld [vmem:[%s2486_s7 + $0xe0] sm:$0xff] }
 0x100   : > { %2130 = vmatmul.msk.bf16.gmra.mxu0 %vm469_vm3, %v2773_v19 }
 0x101   : > { %v804_v41 = vpop.f32.mrf.mxu2  ;;  %2103 = vmatmul.msk.bf16.gmra.mxu1 %vm469_vm3, %v2773_v19  ;;  %v2929_v35 = vadd.f32 %v980_v40, %v914_v20 }
 0x102   : > { %v837_v56 = vadd.f32 %v804_v41, %v636_v51 }
 0x105   : > { %v982_v2 = vpop.f32.mrf.mxu0 }
 0x106   : > { %v882_v31 = vpop.f32.mrf.mxu3  ;;  %2112 = vmatmul.msk.bf16.gmra.mxu2 %vm469_vm3, %v2780_v63  ;;  %v640_v3 = vpop.f32.mrf.mxu1 }
 0x107   : > { %v915_v32 = vadd.f32 %v882_v31, %v837_v56  ;;  %v641_v4 = vadd.f32 %v640_v3, %v2874_v27  ;;  %v2969_v56 = vpack.c.bf16 %v215_v0, %v215_v0  ;;  %v1029_v31 = vrot.slane %v2823_v28, 5 }
 0x109   : > { %v807_v1 = vpop.f32.mrf.mxu2  ;;  %v2934_v8 = vadd.f32 %v982_v2, %v915_v32  ;;  %v1115_v0 = vunpack.c.l.b16 %v2969_v56 }
 0x10a   : > { %v838_v9 = vadd.f32 %v807_v1, %v639_v42  ;;  %v216_v1 = vld [vmem:[%s2486_s7 + $0xe8] sm:$0x3] }
 0x10b   : > { %2121 = vmatmul.msk.bf16.gmra.mxu3 %vm469_vm3, %v2648_v39 }
 0x10d   : > { %v985_v19 = vpop.f32.mrf.mxu0 }
 0x10e   : > { %v885_v10 = vpop.f32.mrf.mxu3  ;;  %v643_v11 = vpop.f32.mrf.mxu1 }
 0x10f   : > { %v916_v13 = vadd.f32 %v885_v10, %v838_v9  ;;  %v644_v18 = vadd.f32 %v643_v11, %v2830_v36  ;;  %v2098_v11 = vrot.slane %v2819_v47, 9 }
 0x110   : > { %2131 = vmatmul.msk.bf16.gmra.mxu0 %vm469_vm3, %v2794_v59 }
 0x111   : > { %v809_v17 = vpop.f32.mrf.mxu2  ;;  %2104 = vmatmul.msk.bf16.gmra.mxu1 %vm469_vm3, %v2794_v59  ;;  %v2942_v63 = vadd.f32 %v985_v19, %v916_v13  ;;  %v1198_v19 = vshll.u32 %v2969_v56, 16 }
 0x112   : > { %v839_v27 = vadd.f32 %v809_v17, %v641_v4  ;;  %v1032_v17 = vrot.slane %v2845_v21, 5 }
 0x115   : > { %v987_v29 = vpop.f32.mrf.mxu0 }
 0x116   : > { %v887_v23 = vpop.f32.mrf.mxu3  ;;  %2113 = vmatmul.msk.bf16.gmra.mxu2 %vm469_vm3, %v2801_v14  ;;  %v645_v26 = vpop.f32.mrf.mxu1 }
 0x117   : > { %v917_v39 = vadd.f32 %v887_v23, %v839_v27  ;;  %v646_v44 = vadd.f32 %v645_v26, %v2856_v5  ;;  %v214_v5 = vld [vmem:[%s2486_s7 + $0xd8] sm:$0xff]  ;;  %v246_v27 = vpack.c.bf16 %v216_v1, %v216_v1 }
 0x119   : > { %v812_v34 = vpop.f32.mrf.mxu2  ;;  %v2947_v25 = vadd.f32 %v987_v29, %v917_v39  ;;  %v1200_v39 = vrot.slane %v1198_v19, 5  ;;  %v1294_v19 = vrot.slane %v246_v27, 5 }
 0x11a   : > { %v840_v38 = vadd.f32 %v812_v34, %v644_v18 }
 0x11b   : > { %2122 = vmatmul.msk.bf16.gmra.mxu3 %vm469_vm3, %v2588_v60 }
 0x11d   : > { %v990_v59 = vpop.f32.mrf.mxu0 }
 0x11e   : > { %v890_v54 = vpop.f32.mrf.mxu3  ;;  %v648_v6 = vpop.f32.mrf.mxu1 }
 0x11f   : > { %v918_v43 = vadd.f32 %v890_v54, %v840_v38  ;;  %v649_v62 = vadd.f32 %v648_v6, %v2878_v33  ;;  %v1208_v6 = vshll.u32 %v246_v27, 16 }
 0x120   : > { %2132 = vmatmul.msk.bf16.gmra.mxu0 %vm469_vm3, %v2821_v49 }
 0x121   : > { %v814_v14 = vpop.f32.mrf.mxu2  ;;  %2105 = vmatmul.msk.bf16.gmra.mxu1 %vm469_vm3, %v2821_v49  ;;  %v2956_v36 = vadd.f32 %v990_v59, %v918_v43  ;;  %v2967_v49 = vpack.c.bf16 %v214_v5, %v214_v5 }
 0x122   : > { %v841_v51 = vadd.f32 %v814_v14, %v646_v44 }
 0x123   : > { %v1189_v3 = vshrl.u32 %v2967_v49, 16  ;;  %v1192_v9 = vshll.u32 %v2967_v49, 16 }
 0x125   : > { %v992_v12 = vpop.f32.mrf.mxu0  ;;  %v1191_v29 = vrot.slane %v1189_v3, 4  ;;  %v1194_v23 = vrot.slane %v1192_v9, 5  ;;  %v2126_v3 = vrot.slane %v2967_v49, 9 }
 0x126   : > { %v892_v60 = vpop.f32.mrf.mxu3  ;;  %2114 = vmatmul.msk.bf16.gmra.mxu2 %vm469_vm3, %v2838_v55  ;;  %v650_v40 = vpop.f32.mrf.mxu1 }
 0x127   : > { %v919_v61 = vadd.f32 %v892_v60, %v841_v51  ;;  %v651_v4 = vadd.f32 %v650_v40, %v2888_v53  ;;  %v1031_v53 = vrot.slane %v1029_v31, 4  ;;  %v1195_v54 = vor.u32 %v1194_v23, %v1191_v29 }
 0x128   : > { %v1210_v40 = vrot.slane %v1208_v6, 5 }
 0x129   : > { %v817_v20 = vpop.f32.mrf.mxu2  ;;  %v2963_v42 = vadd.f32 %v992_v12, %v919_v61  ;;  %v1033_v38 = vsel %vm2667_vm7, %v1031_v53, %v1032_v17 }
 0x12a   : > { %v842_v41 = vadd.f32 %v817_v20, %v649_v62  ;;  %v1037_v14 = vunpack.c.l.b16 %v1033_v38 }
 0x12b   : > { %2123 = vmatmul.msk.bf16.gmra.mxu3 %vm469_vm3, %v2664_v7  ;;  %v1202_v7 = vshrl.u32 %v2969_v56, 16 }
 0x12d   : > { %v995_v2 = vpop.f32.mrf.mxu0  ;;  %v1204_v26 = vrot.slane %v1202_v7, 4 }
 0x12e   : > { %v895_v55 = vpop.f32.mrf.mxu3  ;;  %v653_v33 = vpop.f32.mrf.mxu1 }
 0x12f   : > { %v920_v32 = vadd.f32 %v895_v55, %v842_v41  ;;  %v654_v21 = vadd.f32 %v653_v33, %v2843_v58  ;;  %v1205_v43 = vor.u32 %v1204_v26, %v1200_v39  ;;  %v1114_v58 = vunpack.c.l.b16 %v2967_v49 }
 0x130   : > { %2133 = vmatmul.msk.bf16.gmra.mxu0 %vm469_vm3, %v2862_v24  ;;  %v1291_v41 = vrot.slane %v2969_v56, 5 }
 0x131   : > { %v819_v10 = vpop.f32.mrf.mxu2  ;;  %2106 = vmatmul.msk.bf16.gmra.mxu1 %vm469_vm3, %v2862_v24  ;;  %v2982_v28 = vadd.f32 %v995_v2, %v920_v32  ;;  %v1030_v24 = vsel %vm2667_vm7, %v2098_v11, %v1029_v31  ;;  %v1206_v61 = vrot.slane %v1205_v43, 4  ;;  %v1116_v1 = vpack.c.b16 %v1115_v0, %v1114_v58 }
 0x132   : > { %v843_v13 = vadd.f32 %v819_v10, %v651_v4  ;;  %v1036_v44 = vunpack.c.l.b16 %v1030_v24  ;;  %v1293_v9 = vrot.slane %v1291_v41, 4  ;;  %v1292_v45 = vsel %vm2667_vm7, %v2126_v3, %v1291_v41 }
 0x133   : > { %v1298_v23 = vunpack.c.l.b16 %v1292_v45 }
 0x134   : > { %v1038_v62 = vpack.c.b16 %v1037_v14, %v1036_v44  ;;  %v1295_v11 = vsel %vm2667_vm7, %v1293_v9, %v1294_v19  ;;  %vm1936_vm7 = vcmask 326656  }
 0x135   : > { %v997_v18 = vpop.f32.mrf.mxu0 }
 0x136   : > { %v897_v34 = vpop.f32.mrf.mxu3  ;;  %2115 = vmatmul.msk.bf16.gmra.mxu2 %vm469_vm3, %v2876_v22  ;;  %v655_v59 = vpop.f32.mrf.mxu1  ;;  %v1196_v22 = vrot.slane %v1195_v54, 4 }
 0x137   : > { %v921_v47 = vadd.f32 %v897_v34, %v843_v13  ;;  %v656_v31 = vadd.f32 %v655_v59, %v2866_v48 }
 0x138   : > { %v1201_v32 = vsel %vm2524_vm4, %v1196_v22, %v1200_v39  ;;  %v1299_v39 = vunpack.c.l.b16 %v1295_v11 }
 0x139   : > { %v822_v51 = vpop.f32.mrf.mxu2  ;;  %v2993_v12 = vadd.f32 %v997_v18, %v921_v47  ;;  %v1214_v48 = vunpack.c.l.b16 %v1201_v32 }
 0x13a   : > { %v844_v60 = vadd.f32 %v822_v51, %v654_v21  ;;  %v1300_v34 = vpack.c.b16 %v1299_v39, %v1298_v23 }
 0x13b   : > { %2124 = vmatmul.msk.bf16.gmra.mxu3 %vm469_vm3, %v2882_v37  ;;  %v1211_v37 = vsel %vm2524_vm4, %v1206_v61, %v1210_v40  ;;  %vm1925_vm4 = vcmask 785408  }
 0x13c   : > { %v1215_v7 = vunpack.c.l.b16 %v1211_v37 }
 0x13d   : > { %v1000_v5 = vpop.f32.mrf.mxu0 }
 0x13e   : > { %v900_v20 = vpop.f32.mrf.mxu3  ;;  %v658_v55 = vpop.f32.mrf.mxu1  ;;  %v1216_v49 = vpack.c.b16 %v1215_v7, %v1214_v48 }
 0x13f   : > { %v922_v2 = vadd.f32 %v900_v20, %v844_v60  ;;  %v659_v29 = vadd.f32 %v658_v55, %v2884_v50  ;;  %v3029_v20 = vld [vmem:[%s3403_s2] ss:$0 sm:$0xff] }
 0x140   : > { %2134 = vmatmul.msk.bf16.gmra.mxu0 %vm469_vm3, %v1038_v62 }
 0x141   : > { %v824_v33 = vpop.f32.mrf.mxu2  ;;  %2107 = vmatmul.msk.bf16.gmra.mxu1 %vm469_vm3, %v1038_v62  ;;  %v3008_v4 = vadd.f32 %v1000_v5, %v922_v2 }
 0x142   : > { %v845_v56 = vadd.f32 %v824_v33, %v656_v31 }
 0x145   : > { %v1002_v10 = vpop.f32.mrf.mxu0 }
 0x146   : > { %v902_v13 = vpop.f32.mrf.mxu3  ;;  %2116 = vmatmul.msk.bf16.gmra.mxu2 %vm469_vm3, %v1116_v1  ;;  %v660_v17 = vpop.f32.mrf.mxu1 }
 0x147   : > { %v923_v53 = vadd.f32 %v902_v13, %v845_v56  ;;  %v661_v16 = vadd.f32 %v660_v17, %v2892_v46 }
 0x149   : > { %v827_v27 = vpop.f32.mrf.mxu2  ;;  %v3016_v26 = vadd.f32 %v1002_v10, %v923_v53 }
 0x14a   : > { %v846_v18 = vadd.f32 %v827_v27, %v659_v29 }
 0x14b   : > { %2125 = vmatmul.msk.bf16.gmra.mxu3 %vm469_vm3, %v1216_v49 }
 0x14d   : > { %v1005_v24 = vpop.f32.mrf.mxu0 }
 0x14e   : > { %v905_v38 = vpop.f32.mrf.mxu3  ;;  %v1054_v59 = vpop.f32.mrf.mxu1 }
 0x14f   : > { %v924_v47 = vadd.f32 %v905_v38, %v846_v18  ;;  %v1094_v51 = vadd.f32 %v1054_v59, %v2902_v57 }
 0x150   : > { %2135 = vmatmul.msk.bf16.gmra.mxu0 %vm469_vm3, %v1300_v34 }
 0x151   : > { %v829_v21 = vpop.f32.mrf.mxu2  ;;  %v3021_v54 = vadd.f32 %v1005_v24, %v924_v47 }
 0x152   : > { %v847_v50 = vadd.f32 %v829_v21, %v661_v16 }
 0x155   : > { %v1007_v43 = vpop.f32.mrf.mxu0 }
 0x156   : > { %v907_v6 = vpop.f32.mrf.mxu3  ;;  %v1056_v14 = vpop.f32.mrf.mxu1 }
 0x157   : > { %v925_v44 = vadd.f32 %v907_v6, %v847_v50  ;;  %v1095_v0 = vadd.f32 %v1056_v14, %v2906_v15 }
 0x159   : > { %v1132_v60 = vpop.f32.mrf.mxu2  ;;  %v3024_v22 = vadd.f32 %v1007_v43, %v925_v44 }
 0x15a   : > { %v1172_v61 = vadd.f32 %v1132_v60, %v1094_v51 }
 0x15d   : > { %v1316_v40 = vpop.f32.mrf.mxu0 }
 0x15e   : > { %v1232_v62 = vpop.f32.mrf.mxu3  ;;  %v1059_v46 = vpop.f32.mrf.mxu1 }
 0x15f   : > { %v1272_v5 = vadd.f32 %v1232_v62, %v1172_v61  ;;  %v1096_v1 = vadd.f32 %v1059_v46, %v2915_v30 }
 0x161   : > { %v1356_v58 = vadd.f32 %v1316_v40, %v1272_v5  ;;  %v1134_v41 = vpop.f32.mrf.mxu2 }
 0x162   : > { %v1173_v2 = vadd.f32 %v1134_v41, %v1095_v0 }
 0x163   : > { %v1376_v57 = vadd.f32 %v3029_v20, %v1356_v58 }
 0x165   : > { %v1392_v55 = vmax.f32 %v1376_v57, 0.0  ;;  %v1318_v31 = vpop.f32.mrf.mxu0 }
 0x166   : > { %v1234_v32 = vpop.f32.mrf.mxu3  ;;  %v1061_v3 = vpop.f32.mrf.mxu1 }
 0x167   : > { %v1273_v37 = vadd.f32 %v1234_v32, %v1173_v2  ;;  %v1425_v33 = vrot.slane %v1392_v55, 7  ;;  %v1097_v49 = vadd.f32 %v1061_v3, %v2920_v52 }
 0x169   : > { %v1357_v56 = vadd.f32 %v1318_v31, %v1273_v37  ;;  %1449 = vrot.lane.b32.xlu0 %v1425_v33, %s2355_s29  ;;  %v1137_v9 = vpop.f32.mrf.mxu2 }
 0x16a   : > { %v1174_v19 = vadd.f32 %v1137_v9, %v1096_v1 }
 0x16b   : > { %v1377_v15 = vadd.f32 %v3029_v20, %v1357_v56 }
 0x16d   : > { %v1393_v48 = vmax.f32 %v1377_v15, 0.0  ;;  %v1321_v7 = vpop.f32.mrf.mxu0 }
 0x16e   : > { %v1237_v10 = vpop.f32.mrf.mxu3  ;;  %v1064_v11 = vpop.f32.mrf.mxu1 }
 0x16f   : > { %v1274_v13 = vadd.f32 %v1237_v10, %v1174_v19  ;;  %v1426_v45 = vrot.slane %v1393_v48, 7  ;;  %v1098_v59 = vadd.f32 %v1064_v11, %v2929_v35 }
 0x171   : > { %v1358_v53 = vadd.f32 %v1321_v7, %v1274_v13  ;;  %1453 = vrot.lane.b32.xlu1 %v1426_v45, %s2355_s29  ;;  %v1427_v30 = vsel %vm1424_vm8, %v1425_v33, %v1426_v45  ;;  %v1139_v17 = vpop.f32.mrf.mxu2 }
 0x172   : > { %1451 = vrot.lane.b32.xlu0 %v1427_v30, %s2355_s29  ;;  %v1175_v23 = vadd.f32 %v1139_v17, %v1097_v49 }
 0x173   : > { %v1378_v29 = vadd.f32 %v3029_v20, %v1358_v53 }
 0x175   : > { %v1394_v39 = vmax.f32 %v1378_v29, 0.0  ;;  %v1323_v27 = vpop.f32.mrf.mxu0 }
 0x176   : > { %v1239_v18 = vpop.f32.mrf.mxu3  ;;  %v1066_v38 = vpop.f32.mrf.mxu1 }
 0x177   : > { %v1275_v34 = vadd.f32 %v1239_v18, %v1175_v23  ;;  %v1428_v24 = vrot.slane %v1394_v39, 7  ;;  %v1099_v61 = vadd.f32 %v1066_v38, %v2934_v8 }
 0x179   : > { %v1359_v47 = vadd.f32 %v1323_v27, %v1275_v34  ;;  %1455 = vrot.lane.b32.xlu1 %v1428_v24, %s2355_s29  ;;  %v1142_v52 = vpop.f32.mrf.mxu2 }
 0x17a   : > { %v1176_v16 = vadd.f32 %v1142_v52, %v1098_v59 }
 0x17b   : > { %v1379_v21 = vadd.f32 %v3029_v20, %v1359_v47 }
 0x17d   : > { %v1395_v50 = vmax.f32 %v1379_v21, 0.0  ;;  %v1326_v43 = vpop.f32.mrf.mxu0 }
 0x17e   : > { %v1242_v6 = vpop.f32.mrf.mxu3  ;;  %v1069_v51 = vpop.f32.mrf.mxu1 }
 0x17f   : > { %v1276_v44 = vadd.f32 %v1242_v6, %v1176_v16  ;;  %v1429_v14 = vrot.slane %v1395_v50, 7  ;;  %v1100_v31 = vadd.f32 %v1069_v51, %v2942_v63 }
 0x181   : > { %v1360_v60 = vadd.f32 %v1326_v43, %v1276_v44  ;;  %1459 = vrot.lane.b32.xlu2 %v1429_v14, %s2355_s29  ;;  %v1144_v40 = vpop.f32.mrf.mxu2  ;;  %v1430_v35 = vsel %vm1424_vm8, %v1428_v24, %v1429_v14 }
 0x182   : > { %v1177_v5 = vadd.f32 %v1144_v40, %v1099_v61 }
 0x183   : > { %v1380_v62 = vadd.f32 %v3029_v20, %v1360_v60 }
 0x185   : > { %v1396_v46 = vmax.f32 %v1380_v62, 0.0  ;;  %v1328_v58 = vpop.f32.mrf.mxu0 }
 0x186   : > { %v1244_v0 = vpop.f32.mrf.mxu3  ;;  %v1071_v57 = vpop.f32.mrf.mxu1 }
 0x187   : > { %v1277_v41 = vadd.f32 %v1244_v0, %v1177_v5  ;;  %v1431_v2 = vrot.slane %v1396_v46, 7  ;;  %v1101_v48 = vadd.f32 %v1071_v57, %v2947_v25 }
 0x189   : > { %v1361_v55 = vadd.f32 %v1328_v58, %v1277_v41  ;;  %1461 = vrot.lane.b32.xlu0 %v1431_v2, %s2355_s29  ;;  %1457 = vrot.lane.b32.xlu2 %v1430_v35, %s2355_s29  ;;  %v1147_v8 = vpop.f32.mrf.mxu2 }
 0x18a   : > { %v1178_v37 = vadd.f32 %v1147_v8, %v1100_v31 }
 0x18b   : > { %v1381_v32 = vadd.f32 %v3029_v20, %v1361_v55 }
 0x18d   : > { %v1397_v33 = vmax.f32 %v1381_v32, 0.0  ;;  %v1331_v3 = vpop.f32.mrf.mxu0 }
 0x18e   : > { %v1247_v56 = vpop.f32.mrf.mxu3  ;;  %v1074_v19 = vpop.f32.mrf.mxu1 }
 0x18f   : > { %v1278_v1 = vadd.f32 %v1247_v56, %v1178_v37  ;;  %v1432_v9 = vrot.slane %v1397_v33, 7  ;;  %v1102_v23 = vadd.f32 %v1074_v19, %v2956_v36 }
 0x191   : > { %v1362_v15 = vadd.f32 %v1331_v3, %v1278_v1  ;;  %1465 = vrot.lane.b32.xlu2 %v1432_v9, %s2355_s29  ;;  %v1433_v63 = vsel %vm1424_vm8, %v1431_v2, %v1432_v9  ;;  %v1149_v7 = vpop.f32.mrf.mxu2 }
 0x192   : > { %1463 = vrot.lane.b32.xlu1 %v1433_v63, %s2355_s29  ;;  %v1179_v13 = vadd.f32 %v1149_v7, %v1101_v48 }
 0x193   : > { %v1382_v10 = vadd.f32 %v3029_v20, %v1362_v15 }
 0x195   : > { %v1398_v45 = vmax.f32 %v1382_v10, 0.0  ;;  %v1333_v11 = vpop.f32.mrf.mxu0 }
 0x196   : > { %v1249_v53 = vpop.f32.mrf.mxu3  ;;  %v1076_v17 = vpop.f32.mrf.mxu1 }
 0x197   : > { %v1279_v49 = vadd.f32 %v1249_v53, %v1179_v13  ;;  %v1434_v30 = vrot.slane %v1398_v45, 7  ;;  %v1103_v16 = vadd.f32 %v1076_v17, %v2963_v42 }
 0x199   : > { %v1363_v29 = vadd.f32 %v1333_v11, %v1279_v49  ;;  %1467 = vrot.lane.b32.xlu2 %v1434_v30, %s2355_s29  ;;  %v1152_v25 = vpop.f32.mrf.mxu2 }
 0x19a   : > { %v1180_v27 = vadd.f32 %v1152_v25, %v1102_v23 }
 0x19b   : > { %v1383_v39 = vadd.f32 %v3029_v20, %v1363_v29 }
 0x19d   : > { %v1399_v18 = vmax.f32 %v1383_v39, 0.0  ;;  %v1336_v34 = vpop.f32.mrf.mxu0 }
 0x19e   : > { %v1252_v24 = vpop.f32.mrf.mxu3  ;;  %v1079_v59 = vpop.f32.mrf.mxu1 }
 0x19f   : > { %v3060_v38 = vrot.slane %v1399_v18, 7  ;;  %v1280_v47 = vadd.f32 %v1252_v24, %v1180_v27  ;;  %v1104_v35 = vadd.f32 %v1079_v59, %v2982_v28 }
 0x1a1   : > { %v1364_v52 = vadd.f32 %v1336_v34, %v1280_v47  ;;  %v1436_v21 = vsel %vm1424_vm8, %v1434_v30, %v3060_v38  ;;  %v1154_v36 = vpop.f32.mrf.mxu2 }
 0x1a2   : > { %1469 = vrot.lane.b32.xlu2 %v1436_v21, %s2355_s29  ;;  %v1181_v43 = vadd.f32 %v1154_v36, %v1103_v16 }
 0x1a3   : > { %v1384_v50 = vadd.f32 %v3029_v20, %v1364_v52 }
 0x1a5   : > { %v1400_v6 = vmax.f32 %v1384_v50, 0.0  ;;  %v1338_v44 = vpop.f32.mrf.mxu0 }
 0x1a6   : > { %v1254_v14 = vpop.f32.mrf.mxu3  ;;  %v1081_v61 = vpop.f32.mrf.mxu1 }
 0x1a7   : > { %v1281_v51 = vadd.f32 %v1254_v14, %v1181_v43  ;;  %v1437_v60 = vrot.slane %v1400_v6, 7  ;;  %v1105_v31 = vadd.f32 %v1081_v61, %v2993_v12 }
 0x1a9   : > { %v1365_v40 = vadd.f32 %v1338_v44, %v1281_v51  ;;  %1473 = vrot.lane.b32.xlu1 %v1437_v60, %s2355_s29  ;;  %v1157_v42 = vpop.f32.mrf.mxu2 }
 0x1aa   : > { %v1182_v5 = vadd.f32 %v1157_v42, %v1104_v35 }
 0x1ab   : > { %v1385_v62 = vadd.f32 %v3029_v20, %v1365_v40 }
 0x1ad   : > { %v1401_v46 = vmax.f32 %v1385_v62, 0.0  ;;  %v1341_v58 = vpop.f32.mrf.mxu0 }
 0x1ae   : > { %v1257_v0 = vpop.f32.mrf.mxu3  ;;  %v1084_v57 = vpop.f32.mrf.mxu1 }
 0x1af   : > { %v3070_v41 = vrot.slane %v1401_v46, 7  ;;  %v1282_v2 = vadd.f32 %v1257_v0, %v1182_v5  ;;  %v1106_v15 = vadd.f32 %v1084_v57, %v3008_v4 }
 0x1b1   : > { %v1366_v55 = vadd.f32 %v1341_v58, %v1282_v2  ;;  %v1439_v8 = vsel %vm1424_vm8, %v1437_v60, %v3070_v41  ;;  %v1159_v28 = vpop.f32.mrf.mxu2 }
 0x1b2   : > { %1475 = vrot.lane.b32.xlu2 %v1439_v8, %s2355_s29  ;;  %v1183_v37 = vadd.f32 %v1159_v28, %v1105_v31 }
 0x1b3   : > { %v1386_v32 = vadd.f32 %v3029_v20, %v1366_v55 }
 0x1b5   : > { %v1402_v33 = vmax.f32 %v1386_v32, 0.0  ;;  %v1343_v3 = vpop.f32.mrf.mxu0 }
 0x1b6   : > { %v1259_v56 = vpop.f32.mrf.mxu3  ;;  %v1086_v48 = vpop.f32.mrf.mxu1 }
 0x1b7   : > { %v1283_v1 = vadd.f32 %v1259_v56, %v1183_v37  ;;  %v1440_v9 = vrot.slane %v1402_v33, 7  ;;  %v1107_v30 = vadd.f32 %v1086_v48, %v3016_v26 }
 0x1b9   : > { %v1367_v19 = vadd.f32 %v1343_v3, %v1283_v1  ;;  %1479 = vrot.lane.b32.xlu0 %v1440_v9, %s2355_s29  ;;  %v1162_v12 = vpop.f32.mrf.mxu2 }
 0x1ba   : > { %v1184_v7 = vadd.f32 %v1162_v12, %v1106_v15  ;;  %v2236_v15 = vld [vmem:[%s2486_s7 + $0x20] sm:$0xff] }
 0x1bb   : > { %v1387_v63 = vadd.f32 %v3029_v20, %v1367_v19 }
 0x1bd   : > { %v1403_v10 = vmax.f32 %v1387_v63, 0.0  ;;  %v1346_v13 = vpop.f32.mrf.mxu0  ;;  %v2237_v63 = vld [vmem:[%s2486_s7 + $0x38] sm:$0xff] }
 0x1be   : > { %v1262_v45 = vpop.f32.mrf.mxu3  ;;  %v1089_v25 = vpop.f32.mrf.mxu1 }
 0x1bf   : > { %v1284_v11 = vadd.f32 %v1262_v45, %v1184_v7  ;;  %v1441_v53 = vrot.slane %v1403_v10, 7  ;;  %v1108_v59 = vadd.f32 %v1089_v25, %v3021_v54  ;;  %v2238_v10 = vld [vmem:[%s2486_s7 + $0x68] sm:$0xff]  ;;  %v2239_v45 = vld [vmem:[%s2486_s7 + $0x18] sm:$0xff] }
 0x1c1   : > { %v1368_v49 = vadd.f32 %v1346_v13, %v1284_v11  ;;  %1483 = vrot.lane.b32.xlu1 %v1441_v53, %s2355_s29  ;;  %v1164_v17 = vpop.f32.mrf.mxu2  ;;  %v1442_v4 = vsel %vm1424_vm8, %v1440_v9, %v1441_v53  ;;  %v2235_v9 = vld [vmem:[%s2486_s7 + $0x30] sm:$0xff] }
 0x1c2   : > { %v1185_v23 = vadd.f32 %v1164_v17, %v1107_v30 }
 0x1c3   : > { %v1388_v29 = vadd.f32 %v3029_v20, %v1368_v49  ;;  %v2240_v49 = vld [vmem:[%s2486_s7 + $0x50] sm:$0xff] }
 0x1c5   : > { %v1404_v39 = vmax.f32 %v1388_v29, 0.0  ;;  %v1348_v27 = vpop.f32.mrf.mxu0  ;;  %v2241_v29 = vld [vmem:[%s2486_s7 + $0x60] sm:$0xff] }
 0x1c6   : > { %v1264_v18 = vpop.f32.mrf.mxu3  ;;  %v1091_v21 = vpop.f32.mrf.mxu1 }
 0x1c7   : > { %v1285_v34 = vadd.f32 %v1264_v18, %v1185_v23  ;;  %v1443_v24 = vrot.slane %v1404_v39, 7  ;;  %v1109_v51 = vadd.f32 %v1091_v21, %v3024_v22  ;;  %v2242_v39 = vld [vmem:[%s2486_s7 + $0x48] sm:$0xff] }
 0x1c9   : > { %v1369_v47 = vadd.f32 %v1348_v27, %v1285_v34  ;;  %1481 = vrot.lane.b32.xlu1 %v1442_v4, %s2355_s29  ;;  %1485 = vrot.lane.b32.xlu0 %v1443_v24, %s2355_s29  ;;  %v1167_v26 = vpop.f32.mrf.mxu2 }
 0x1ca   : > { %v1186_v16 = vadd.f32 %v1167_v26, %v1108_v59 }
 0x1cb   : > { %v1389_v52 = vadd.f32 %v3029_v20, %v1369_v47 }
 0x1cd   : > { %v1405_v36 = vmax.f32 %v1389_v52, 0.0  ;;  %v1351_v50 = vpop.f32.mrf.mxu0  ;;  %v2356_v52 = vmov 1983009808  }
 0x1ce   : > { %v1267_v43 = vpop.f32.mrf.mxu3 }
 0x1cf   : > { %v1286_v6 = vadd.f32 %v1267_v43, %v1186_v16  ;;  %v1444_v44 = vrot.slane %v1405_v36, 7  ;;  %v1632_v16 = vunpack.c.l.s4 %v2356_v52  ;;  %v2251_v52 = vld [vmem:[%s2486_s7 + $0x90] sm:$0xff] }
 0x1d1   : > { %v1370_v14 = vadd.f32 %v1351_v50, %v1286_v6  ;;  %1489 = vrot.lane.b32.xlu0 %v1444_v44, %s2355_s29  ;;  %v1445_v54 = vsel %vm1424_vm8, %v1443_v24, %v1444_v44  ;;  %v1169_v60 = vpop.f32.mrf.mxu2 }
 0x1d2   : > { %1487 = vrot.lane.b32.xlu1 %v1445_v54, %s2355_s29  ;;  %v1187_v40 = vadd.f32 %v1169_v60, %v1109_v51  ;;  %v3147_v51 = vunpack.c.0.s8 %v1632_v16  ;;  %v2243_v54 = vld [vmem:[%s2486_s7 + $0x58] sm:$0x3] }
 0x1d3   : > { %v1390_v61 = vadd.f32 %v3029_v20, %v1370_v14 }
 0x1d5   : > { %v1406_v35 = vmax.f32 %v1390_v61, 0.0  ;;  %v1353_v46 = vpop.f32.mrf.mxu0 }
 0x1d6   : > { %v1269_v42 = vpop.f32.mrf.mxu3 }
 0x1d7   : > { %v1287_v62 = vadd.f32 %v1269_v42, %v1187_v40  ;;  %v1446_v5 = vrot.slane %v1406_v35, 7 }
 0x1d9   : > { %v1371_v58 = vadd.f32 %v1353_v46, %v1287_v62  ;;  %1491 = vrot.lane.b32.xlu2 %v1446_v5, %s2355_s29  ;;  %v2244_v46 = vld [vmem:[%s2486_s7 + $0x78] sm:$0xff] }
 0x1da   : > { %1477 = vrot.lane.b32.xlu1 %v3070_v41, %s2355_s29 }
 0x1db   : > { %v1391_v22 = vadd.f32 %v3029_v20, %v1371_v58  ;;  %v3102_v55 = vpop.permute.xlu2 %1459  ;;  %v1450_v8 = vpop.permute.xlu0 %1449 }
 0x1dc   : > { %v1521_v11 = vsel %vm469_vm3, %v2239_v45, %v1450_v8 }
 0x1dd   : > { %v1407_v0 = vmax.f32 %v1391_v22, 0.0  ;;  %v1570_v24 = vrot.slane %v1521_v11, 1  ;;  %v2245_v22 = vld [vmem:[%s2486_s7 + $0x40] sm:$0x3] }
 0x1df   : > { %v1447_v2 = vrot.slane %v1407_v0, 7  ;;  %v1526_v0 = vsel %vm469_vm3, %v2245_v22, %v3102_v55 }
 0x1e1   : > { %1495 = vrot.lane.b32.xlu2 %v1447_v2, %s2355_s29  ;;  %v1448_v57 = vsel %vm1424_vm8, %v1446_v5, %v1447_v2  ;;  %v2246_v2 = vld [vmem:[%s2486_s7 + $0x28] sm:$0x3]  ;;  %vm1929_vm8 = vcmask 982016  }
 0x1e2   : > { %1493 = vrot.lane.b32.xlu0 %v1448_v57, %s2355_s29 }
 0x1e3   : > { %v3104_v31 = vpop.permute.xlu1 %1453  ;;  %v1458_v41 = vpop.permute.xlu2 %1457 }
 0x1e4   : > { %v1452_v37 = vpop.permute.xlu0 %1451  ;;  %v3118_v7 = vsel %vm469_vm3, %v2237_v63, %v1458_v41  ;;  %v1523_v57 = vsel %vm469_vm3, %v2246_v2, %v3104_v31 }
 0x1e5   : > { %v3112_v12 = vsel %vm469_vm3, %v2236_v15, %v1452_v37  ;;  %v1576_v25 = vrot.slane %v3118_v7, 1  ;;  %v2249_v15 = vld [vmem:[%s2486_s7 + $0xa8] sm:$0xff] }
 0x1e6   : > { %v1571_v4 = vrot.slane %v3112_v12, 1 }
 0x1e8   : > { %v1572_v21 = vsel %vm1569_vm9, %v1570_v24, %v1571_v4 }
 0x1e9   : > { %v1629_v14 = vrot.slane %v1572_v21, 4 }
 0x1ea   : > { %1471 = vrot.lane.b32.xlu0 %v3060_v38, %s2355_s29 }
 0x1eb   : > { %v1456_v20 = vpop.permute.xlu1 %1455  ;;  %v1466_v28 = vpop.permute.xlu2 %1465 }
 0x1ec   : > { %v1524_v19 = vsel %vm469_vm3, %v2235_v9, %v1456_v20  ;;  %v1529_v60 = vsel %vm469_vm3, %v2243_v54, %v1466_v28  ;;  %v1578_v9 = vrot.slane %v1526_v0, 1  ;;  %v2253_v54 = vld [vmem:[%s2486_s7 + $0xc0] sm:$0xff] }
 0x1ed   : > { %v1575_v53 = vrot.slane %v1524_v19, 1  ;;  %v1583_v41 = vrot.slane %v1529_v60, 1 }
 0x1ef   : > { %v1577_v59 = vsel %vm1569_vm9, %v1575_v53, %v1576_v25 }
 0x1f0   : > { %v1641_v6 = vrot.slane %v1577_v59, 4 }
 0x1f3   : > { %v1468_v3 = vpop.permute.xlu2 %1467 }
 0x1f4   : > { %v1530_v23 = vsel %vm469_vm3, %v2241_v29, %v1468_v3 }
 0x1f5   : > { %v1585_v26 = vrot.slane %v1530_v23, 1 }
 0x1fb   : > { %v1462_v56 = vpop.permute.xlu0 %1461 }
 0x1fc   : > { %v1470_v38 = vpop.permute.xlu2 %1469  ;;  %v1527_v27 = vsel %vm469_vm3, %v2242_v39, %v1462_v56  ;;  %v2357_v56 = vmov 1934713408   ;;  %v2250_v39 = vld [vmem:[%s2486_s7 + $0x98] sm:$0xff] }
 0x1fd   : > { %v3122_v13 = vsel %vm469_vm3, %v2238_v10, %v1470_v38  ;;  %v1580_v36 = vrot.slane %v1527_v27, 1  ;;  %v1680_v38 = vunpack.c.l.s4 %v2357_v56  ;;  %v1573_v10 = vrot.slane %v1523_v57, 1 }
 0x1fe   : > { %v1586_v18 = vrot.slane %v3122_v13, 1 }
 0x200   : > { %v1587_v50 = vsel %vm1569_vm9, %v1585_v26, %v1586_v18  ;;  %v3200_v26 = vsel %vm1569_vm9, %v1576_v25, %v1578_v9 }
 0x201   : > { %v1639_v61 = vrot.slane %v1587_v50, 4  ;;  %v1642_v40 = vsel %vm1627_vm10, %v1587_v50, %v1641_v6  ;;  %v1753_v0 = vrot.slane %v3200_v26, 4 }
 0x202   : > { %v1650_v20 = vperm.slane %v1642_v40, %v3147_v51 }
 0x203   : > { %v1640_v8 = vsel %vm1627_vm10, %v1639_v61, %v1577_v59  ;;  %v3195_v59 = vunpack.c.0.s8 %v1680_v38 }
 0x204   : > { %v1464_v32 = vpop.permute.xlu1 %1463  ;;  %v3179_v45 = vperm.slane %v1640_v8, %v3147_v51  ;;  %v2256_v8 = vld [vmem:[%s2486_s7 + $0xc8] sm:$0xff] }
 0x205   : > { %v1528_v30 = vsel %vm469_vm3, %v2240_v49, %v1464_v32  ;;  %v2247_v32 = vld [vmem:[%s2486_s7 + $0x80] sm:$0xff] }
 0x206   : > { %v1581_v47 = vrot.slane %v1528_v30, 1  ;;  %v1687_v30 = vrot.slane %v1650_v20, 4 }
 0x208   : > { %v1582_v44 = vsel %vm1569_vm9, %v1580_v36, %v1581_v47  ;;  %v3173_v55 = vsel %vm1569_vm9, %v1581_v47, %v1583_v41 }
 0x209   : > { %v1630_v35 = vsel %vm1627_vm10, %v1582_v44, %v1629_v14  ;;  %v1626_v5 = vrot.slane %v1582_v44, 4  ;;  %v1739_v23 = vrot.slane %v3173_v55, 4  ;;  %v2252_v44 = vld [vmem:[%s2486_s7 + $0xb8] sm:$0x3] }
 0x20a   : > { %v1638_v28 = vperm.slane %v1630_v35, %v3147_v51  ;;  %v2254_v35 = vld [vmem:[%s2486_s7 + $0xd0] sm:$0x3] }
 0x20b   : > { %v1628_v19 = vsel %vm1627_vm10, %v1626_v5, %v1572_v21  ;;  %v3209_v21 = vsel %vm1569_vm9, %v1571_v4, %v1573_v10  ;;  %v2257_v10 = vld [vmem:[%s2486_s7 + $0xa0] sm:$0x3] }
 0x20c   : > { %v1476_v34 = vpop.permute.xlu2 %1475  ;;  %v1689_v29 = vrot.slane %v1638_v28, 4  ;;  %v1688_v16 = vsel %vm1627_vm10, %v1687_v30, %v1638_v28 }
 0x20d   : > { %v3166_v37 = vsel %vm469_vm3, %v2247_v32, %v1476_v34  ;;  %v3190_v34 = vperm.slane %v1628_v19, %v3147_v51  ;;  %v3222_v61 = vperm.slane %v1688_v16, %v3195_v59 }
 0x20e   : > { %v1591_v11 = vrot.slane %v3166_v37, 1  ;;  %v1690_v4 = vsel %vm1627_vm10, %v1650_v20, %v1689_v29 }
 0x20f   : > { %v3239_v32 = vperm.slane %v1690_v4, %v3195_v59 }
 0x21b   : > { %v1474_v33 = vpop.permute.xlu1 %1473 }
 0x21c   : > { %v1533_v58 = vsel %vm469_vm3, %v2244_v46, %v1474_v33  ;;  %v2248_v33 = vld [vmem:[%s2486_s7 + $0xb0] sm:$0xff] }
 0x21d   : > { %v1590_v31 = vrot.slane %v1533_v58, 1  ;;  %v2255_v58 = vld [vmem:[%s2486_s7 + $0x88] sm:$0x3] }
 0x21f   : > { %v1592_v24 = vsel %vm1569_vm9, %v1590_v31, %v1591_v11 }
 0x220   : > { %v1653_v6 = vrot.slane %v1592_v24, 4 }
 0x22b   : > { %v3114_v48 = vpop.permute.xlu0 %1479 }
 0x233   : > { %v3106_v1 = vpop.permute.xlu1 %1483  ;;  %v1492_v42 = vpop.permute.xlu2 %1491 }
 0x234   : > { %v1542_v60 = vsel %vm469_vm3, %v2253_v54, %v1492_v42 }
 0x235   : > { %v1605_v20 = vrot.slane %v1542_v60, 1 }
 0x23b   : > { %v3128_v17 = vpop.permute.xlu1 %1481  ;;  %v1486_v43 = vpop.permute.xlu0 %1485 }
 0x23c   : > { %v1539_v63 = vsel %vm469_vm3, %v2249_v15, %v1486_v43  ;;  %v3187_v27 = vsel %vm469_vm3, %v2250_v39, %v3128_v17  ;;  %v1536_v17 = vsel %vm469_vm3, %v2251_v52, %v3114_v48  ;;  %v1496_v50 = vpop.permute.xlu2 %1495  ;;  %v1675_v43 = vrot.slane %v3179_v45, 4 }
 0x23d   : > { %v1600_v47 = vrot.slane %v1539_v63, 1  ;;  %v1596_v36 = vrot.slane %v3187_v27, 1  ;;  %v1740_v48 = vsel %vm1627_vm10, %v1739_v23, %v3209_v21  ;;  %v1595_v14 = vrot.slane %v1536_v17, 1 }
 0x23e   : > { %v1676_v40 = vsel %vm1627_vm10, %v1675_v43, %v3190_v34  ;;  %v3233_v2 = vperm.slane %v1740_v48, %v3147_v51  ;;  %v1733_v15 = vrot.slane %v3222_v61, 4  ;;  %v1677_v63 = vrot.slane %v3190_v34, 4 }
 0x23f   : > { %v1597_v42 = vsel %vm1569_vm9, %v1595_v14, %v1596_v36 }
 0x240   : > { %v1665_v9 = vrot.slane %v1597_v42, 4 }
 0x243   : > { %v1490_v53 = vpop.permute.xlu0 %1489 }
 0x244   : > { %v1488_v62 = vpop.permute.xlu1 %1487  ;;  %v1541_v12 = vsel %vm469_vm3, %v2252_v44, %v1490_v53  ;;  %v1538_v53 = vsel %vm469_vm3, %v2257_v10, %v3106_v1 }
 0x245   : > { %v3170_v3 = vsel %vm469_vm3, %v2248_v33, %v1488_v62  ;;  %v1544_v62 = vsel %vm469_vm3, %v2254_v35, %v1496_v50  ;;  %v1603_v57 = vrot.slane %v1541_v12, 1  ;;  %v3242_v33 = vperm.slane %v1676_v40, %v3195_v59  ;;  %v2258_v12 = vld [vmem:[%s2486_s7 + $0x70] sm:$0x3]  ;;  %s2360_s7 = smov 12  }
 0x246   : > { %v1601_v49 = vrot.slane %v3170_v3, 1  ;;  %v1608_v3 = vrot.slane %v1544_v62, 1  ;;  %v1598_v17 = vrot.slane %v1538_v53, 1 }
 0x248   : > { %v1602_v7 = vsel %vm1569_vm9, %v1600_v47, %v1601_v49  ;;  %v3252_v30 = vsel %vm1569_vm9, %v1601_v49, %v1603_v57  ;;  %v1725_v47 = vrot.slane %v3242_v33, 4 }
 0x249   : > { %v1651_v5 = vrot.slane %v1602_v7, 4  ;;  %v1654_v46 = vsel %vm1627_vm10, %v1602_v7, %v1653_v6  ;;  %v1763_v16 = vrot.slane %v3252_v30, 4  ;;  %v1599_v6 = vsel %vm1569_vm9, %v1596_v36, %v1598_v17 }
 0x24a   : > { %v1662_v31 = vperm.slane %v1654_v46, %v3147_v51 }
 0x24b   : > { %v1652_v19 = vsel %vm1627_vm10, %v1651_v5, %v1592_v24  ;;  %v1737_v24 = vrot.slane %v3239_v32, 4 }
 0x24c   : > { %v1478_v25 = vpop.permute.xlu1 %1477  ;;  %v1713_v49 = vrot.slane %v1662_v31, 4  ;;  %v1658_v52 = vperm.slane %v1652_v19, %v3147_v51  ;;  %v1777_v19 = vrot.slane %v1599_v6, 4 }
 0x24d   : > { %v1535_v22 = vsel %vm469_vm3, %v2255_v58, %v1478_v25 }
 0x24e   : > { %v1593_v56 = vrot.slane %v1535_v22, 1  ;;  %v1701_v35 = vrot.slane %v1658_v52, 4 }
 0x250   : > { %v3262_v34 = vsel %vm1569_vm9, %v1591_v11, %v1593_v56  ;;  %v1678_v11 = vsel %vm1627_vm10, %v3179_v45, %v1677_v63 }
 0x251   : > { %v1764_v44 = vsel %vm1627_vm10, %v1763_v16, %v3262_v34  ;;  %v3283_v36 = vperm.slane %v1678_v11, %v3195_v59 }
 0x252   : > { %v1770_v46 = vperm.slane %v1764_v44, %v3147_v51 }
 0x254   : > { %v1494_v41 = vpop.permute.xlu0 %1493 }
 0x255   : > { %v1543_v28 = vsel %vm469_vm3, %v2256_v8, %v1494_v41 }
 0x256   : > { %v1606_v38 = vrot.slane %v1543_v28, 1 }
 0x258   : > { %v1607_v29 = vsel %vm1569_vm9, %v1605_v20, %v1606_v38  ;;  %v1609_v23 = vsel %vm1569_vm9, %v1606_v38, %v1608_v3  ;;  %v1789_v38 = vrot.slane %v3233_v2, 4 }
 0x259   : > { %v1663_v39 = vrot.slane %v1607_v29, 4  ;;  %v1666_v27 = vsel %vm1627_vm10, %v1607_v29, %v1665_v9  ;;  %v1775_v7 = vrot.slane %v1609_v23, 4  ;;  %v1813_v9 = vrot.slane %v1770_v46, 4 }
 0x25a   : > { %v1674_v1 = vperm.slane %v1666_v27, %v3147_v51  ;;  %v1778_v10 = vsel %vm1627_vm10, %v1609_v23, %v1777_v19 }
 0x25b   : > { %v1664_v50 = vsel %vm1627_vm10, %v1663_v39, %v1597_v42  ;;  %v1776_v62 = vsel %vm1627_vm10, %v1775_v7, %v1599_v6 }
 0x25c   : > { %v1670_v25 = vperm.slane %v1664_v50, %v3147_v51  ;;  %v1472_v43 = vpop.permute.xlu0 %1471  ;;  %v1714_v37 = vsel %vm1627_vm10, %v1674_v1, %v1713_v49  ;;  %v1711_v48 = vrot.slane %v1674_v1, 4  ;;  %v1782_v13 = vperm.slane %v1776_v62, %v3147_v51 }
 0x25d   : > { %v1532_v4 = vsel %vm469_vm3, %v2258_v12, %v1472_v43  ;;  %v1722_v14 = vperm.slane %v1714_v37, %v3195_v59  ;;  %v1786_v49 = vperm.slane %v1778_v10, %v3147_v51 }
 0x25e   : > { %v1588_v54 = vrot.slane %v1532_v4, 1  ;;  %v1712_v60 = vsel %vm1627_vm10, %v1711_v48, %v1662_v31  ;;  %v1699_v40 = vrot.slane %v1670_v25, 4  ;;  %v1702_v42 = vsel %vm1627_vm10, %v1670_v25, %v1701_v35 }
 0x25f   : > { %v1738_v5 = vsel %vm1627_vm10, %v1722_v14, %v1737_v24  ;;  %v1718_v45 = vperm.slane %v1712_v60, %v3195_v59  ;;  %v1710_v31 = vperm.slane %v1702_v42, %v3195_v59  ;;  %v1814_v63 = vsel %vm1627_vm10, %v1782_v13, %v1813_v9 }
 0x260   : > { %v1589_v58 = vsel %vm1569_vm9, %v1586_v18, %v1588_v54  ;;  %1876 = vrot.lane.b32.xlu2 %v1738_v5, %s2358_s4  ;;  %v1700_v22 = vsel %vm1627_vm10, %v1699_v40, %v1658_v52  ;;  %v1741_v18 = vrot.slane %v3209_v21, 4  ;;  %v1729_v21 = vrot.slane %v3283_v36, 4  ;;  %s2137_s4 = sshll.u32 %s2337_s15, 1 }
 0x261   : > { %v1751_v57 = vrot.slane %v1589_v58, 4  ;;  %v1754_v41 = vsel %vm1627_vm10, %v1589_v58, %v1753_v0  ;;  %v1734_v20 = vsel %vm1627_vm10, %v1718_v45, %v1733_v15  ;;  %v3294_v8 = vperm.slane %v1700_v22, %v3195_v59 }
 0x262   : > { %1868 = vrot.lane.b32.xlu1 %v1734_v20, %s2359_s5  ;;  %v1762_v56 = vperm.slane %v1754_v41, %v3147_v51  ;;  %v1730_v53 = vsel %vm1627_vm10, %v1710_v31, %v1729_v21  ;;  %v1731_v29 = vrot.slane %v1718_v45, 4  ;;  %v1765_v24 = vrot.slane %v3262_v34, 4  ;;  %s2138_s5 = sshll.u32 %s2341_s16, 2 }
 0x263   : > { %v1752_v28 = vsel %vm1627_vm10, %v1751_v57, %v3200_v26  ;;  %v1726_v3 = vsel %vm1627_vm10, %v3294_v8, %v1725_v47  ;;  %v1742_v26 = vsel %vm1627_vm10, %v3173_v55, %v1741_v18  ;;  %v1822_v47 = vperm.slane %v1814_v63, %v3195_v59 }
 0x264   : > { %v1758_v0 = vperm.slane %v1752_v28, %v3147_v51  ;;  %1852 = vrot.lane.b32.xlu0 %v1726_v3, %s2360_s7  ;;  %v1799_v27 = vrot.slane %v1762_v56, 4  ;;  %v1750_v55 = vperm.slane %v1742_v26, %v3147_v51  ;;  %v1732_v23 = vsel %vm1627_vm10, %v1731_v29, %v3222_v61  ;;  %s175_s7 = sand.u32 1, %s2329_s13  }
 0x265   : > { %v1735_v17 = vrot.slane %v1722_v14, 4  ;;  %v1766_v34 = vsel %vm1627_vm10, %v3252_v30, %v1765_v24  ;;  %v1823_v50 = vrot.slane %v1786_v49, 4  ;;  %v1811_v7 = vrot.slane %v1782_v13, 4 }
 0x266   : > { %v1790_v15 = vsel %vm1627_vm10, %v1758_v0, %v1789_v38  ;;  %v1800_v16 = vsel %vm1627_vm10, %v1799_v27, %v1750_v55  ;;  %v1727_v43 = vrot.slane %v1710_v31, 4  ;;  %v1774_v37 = vperm.slane %v1766_v34, %v3147_v51 }
 0x267   : > { %v1798_v39 = vperm.slane %v1790_v15, %v3195_v59  ;;  %v1736_v25 = vsel %vm1627_vm10, %v1735_v17, %v3239_v32  ;;  %v1806_v61 = vperm.slane %v1800_v16, %v3195_v59  ;;  %v1787_v48 = vrot.slane %v1758_v0, 4 }
 0x268   : > { %1860 = vrot.lane.b32.xlu2 %v1730_v53, %s2361_s6  ;;  %v1839_v11 = vrot.slane %v1822_v47, 4  ;;  %v1801_v6 = vrot.slane %v1750_v55, 4  ;;  %v1824_v44 = vsel %vm1627_vm10, %v1823_v50, %v1774_v37  ;;  %v1812_v12 = vsel %vm1627_vm10, %v1811_v7, %v1770_v46  ;;  %s1955_s6 = sadd.s32 %s2138_s5, %s2137_s4  ;;  %s2279_s5 = scalar_lea.hbm %s3404_s3, 64 }
 0x269   : > { %v1841_v1 = vrot.slane %v1798_v39, 4  ;;  %v1728_v30 = vsel %vm1627_vm10, %v1727_v43, %v3283_v36  ;;  %v1845_v32 = vrot.slane %v1806_v61, 4  ;;  %v1788_v51 = vsel %vm1627_vm10, %v1787_v48, %v3233_v2 }
 0x26a   : > { %v1840_v4 = vsel %vm1627_vm10, %v1839_v11, %v1798_v39  ;;  %v1802_v14 = vsel %vm1627_vm10, %v1762_v56, %v1801_v6  ;;  %v1830_v54 = vperm.slane %v1824_v44, %v3195_v59  ;;  %v1818_v60 = vperm.slane %v1812_v12, %v3195_v59 }
 0x26b   : > { %v1842_v52 = vsel %vm1627_vm10, %v1822_v47, %v1841_v1  ;;  %v1794_v35 = vperm.slane %v1788_v51, %v3195_v59  ;;  %v1810_v62 = vperm.slane %v1802_v14, %v3195_v59  ;;  %v1825_v5 = vrot.slane %v1774_v37, 4 }
 0x26c   : > { %1864 = vrot.lane.b32.xlu0 %v1732_v23, %s2362_s8  ;;  %1892 = vrot.lane.b32.xlu1 %v1842_v52, %s2355_s29  ;;  %v1846_v40 = vsel %vm1627_vm10, %v1830_v54, %v1845_v32  ;;  %v1843_v45 = vrot.slane %v1830_v54, 4  ;;  %v1835_v36 = vrot.slane %v1818_v60, 4  ;;  %s2371_s29 = smov 40   ;;  %v1723_v38 = vrot.slane %v3294_v8, 4  ;;  %s2042_s8 = sshll.u32 %s175_s7, 4 }
 0x26d   : > { %v1826_v46 = vsel %vm1627_vm10, %v1786_v49, %v1825_v5  ;;  %v1849_v22 = vrot.slane %v1810_v62, 4  ;;  %v1837_v41 = vrot.slane %v1794_v35, 4  ;;  %vm1938_vm9 = vcmask 424960  }
 0x26e   : > { %v1844_v2 = vsel %vm1627_vm10, %v1843_v45, %v1806_v61  ;;  %v1836_v58 = vsel %vm1627_vm10, %v1835_v36, %v1794_v35  ;;  %v1834_v42 = vperm.slane %v1826_v46, %v3195_v59  ;;  %v1724_v19 = vsel %vm1627_vm10, %v1723_v38, %v3242_v33 }
 0x26f   : > { %v1838_v13 = vsel %vm1627_vm10, %v1818_v60, %v1837_v41 }
 0x270   : > { %1872 = vrot.lane.b32.xlu2 %v1736_v25, %s2363_s9  ;;  %v1850_v57 = vsel %vm1627_vm10, %v1834_v42, %v1849_v22  ;;  %v1847_v20 = vrot.slane %v1834_v42, 4  ;;  %s2139_s9 = sshll.u32 %s1955_s6, 3 }
 0x271   : > { %s1957_s16 = scalar_lea.hbm %s3404_s3, %s2139_s9 }
 0x272   : > { %v1848_v18 = vsel %vm1627_vm10, %v1847_v20, %v1810_v62 }
 0x274   : > { %1856 = vrot.lane.b32.xlu1 %v1728_v30, %s2364_s10  ;;  %1888 = vrot.lane.b32.xlu0 %v1840_v4, %s2365_s11  ;;  %s177_s11 = scalar_lea.vmem [#allocation2], %s2042_s8 }
 0x278   : > { %1900 = vrot.lane.b32.xlu2 %v1846_v40, %s2366_s20  ;;  %s1959_s20 = sshll.u32 %s177_s11, 4  ;;  %s1960_s20 = int_to_ptr.vmem [resolvable:$true] %s1959_s20 }
 0x27c   : > { %1896 = vrot.lane.b32.xlu0 %v1844_v2, %s2367_s21  ;;  %1880 = vrot.lane.b32.xlu1 %v1836_v58, %s2368_s24  ;;  %s1961_s21 = sshll.u32 %s1957_s16, 4  ;;  %s1944_s24 = scalar_lea.sflag [#allocation3], %s175_s7  ;;  %s1962_s21 = int_to_ptr.hbm [resolvable:$true] %s1961_s21 }
 0x280   : > { %1908 = vrot.lane.b32.xlu2 %v1850_v57, %s2369_s27  ;;  %s2273_s27 = sshra.s32 %s1962_s21, 4  ;;  %s2274_s27 = int_to_ptr.hbm [resolvable:$true] %s2273_s27 }
 0x281   : > { %p2280_p2 = scmp.lt.s32.totalorder %s2274_s27, %s3404_s3 }
 0x284   : > { %1884 = vrot.lane.b32.xlu0 %v1838_v13, %s2370_s28  ;;  %1904 = vrot.lane.b32.xlu1 %v1848_v18, %s2371_s29  ;;  %s2275_s28 = scalar_lea.hbm %s2274_s27, 16 }
 0x285   : > { %p2276_p13 = scmp.ne.s32.totalorder %s2274_s27, %s2275_s28  ;;  %p2281_p4 = scmp.lt.s32.totalorder %s2279_s5, %s2275_s28 }
 0x287   : > { %p2277_p0 = pnand %p2276_p13, %p2443_p3  ;;  %p2282_p5 = por %p2281_p4, %p2280_p2 }
 0x289   : > { %p2278_p1 = pneg %p2277_p0 }
 0x28b   : > { %p2283_p6 = pnand %p2282_p5, %p2278_p1 }
 0x2ba   : > { %v1877_v28 = vpop.permute.xlu2 %1876 }
 0x2c2   : > { %v1861_v0 = vpop.permute.xlu2 %1860 }
 0x2ca   : > { %v1873_v9 = vpop.permute.xlu2 %1872 }
 0x2d2   : > { %v1901_v8 = vpop.permute.xlu2 %1900 }
 0x2d4   : > { %v1869_v3 = vpop.permute.xlu1 %1868 }
 0x2d6   : > { %v1853_v31 = vpop.permute.xlu0 %1852 }
 0x2d7   : > { %v1912_v21 = vsel %vm1911_vm11, %v1724_v19, %v1853_v31 }
 0x2da   : > { %v1909_v17 = vpop.permute.xlu2 %1908 }
 0x2de   : > { %v1865_v59 = vpop.permute.xlu0 %1864  ;;  %v1893_v56 = vpop.permute.xlu1 %1892 }
 0x2e6   : > { %v1857_v26 = vpop.permute.xlu1 %1856  ;;  %v1889_v15 = vpop.permute.xlu0 %1888 }
 0x2e7   : > { %v1914_v63 = vsel %vm1913_vm12, %v1912_v21, %v1857_v26  ;;  %v1931_v33 = vsel %vm469_vm3, %v1889_v15, %v1893_v56  ;;  %vm1941_vm3 = vcmask 523264  }
 0x2e8   : > { %v1916_v10 = vsel %vm1915_vm13, %v1914_v63, %v1861_v0 }
 0x2e9   : > { %v1918_v53 = vsel %vm1917_vm14, %v1916_v10, %v1865_v59 }
 0x2ea   : > { %v1920_v27 = vsel %vm1919_vm15, %v1918_v53, %v1869_v3 }
 0x2eb   : > { %v1922_v24 = vsel %vm1921_vm0, %v1920_v27, %v1873_v9 }
 0x2ec   : > { %v1924_v1 = vsel %vm1923_vm2, %v1922_v24, %v1877_v28 }
 0x2ee   : > { %v1897_v29 = vpop.permute.xlu0 %1896  ;;  %v1881_v39 = vpop.permute.xlu1 %1880 }
 0x2ef   : > { %v1933_v47 = vsel %vm1932_vm1, %v1931_v33, %v1897_v29  ;;  %v1926_v55 = vsel %vm1925_vm4, %v1924_v1, %v1881_v39 }
 0x2f0   : > { %v1935_v52 = vsel %vm1934_vm5, %v1933_v47, %v1901_v8 }
 0x2f6   : > { %v1885_v49 = vpop.permute.xlu0 %1884  ;;  %v1905_v23 = vpop.permute.xlu1 %1904 }
 0x2f7   : > { %v1928_v16 = vsel %vm1927_vm6, %v1926_v55, %v1885_v49  ;;  %v1937_v34 = vsel %vm1936_vm7, %v1935_v52, %v1905_v23 }
 0x2f8   : > { %v1930_v50 = vsel %vm1929_vm8, %v1928_v16, %v1889_v15  ;;  %v1939_v7 = vsel %vm1938_vm9, %v1937_v34, %v1909_v17 }
 0x2f9   : > { %1940 = vst [vmem:[%s177_s11] sm:$0xff] %v1930_v50 }
 0x2fa   : > { %1942 = vst.msk [vmem:[%s177_s11 + $0x8] sm:$0xff] %vm1941_vm3, %v1939_v7 }
 0x2fb   : > { %2286 = shalt.err (!%p2283_p6)
}
 0x2fc   : > { %2146 = dma.vmem_to_hbm [thread:$0]  (%p2443_p3), %s1960_s20, 256, %s1962_s21, %s1944_s24  }
 0x2fd PF: > { %p2152_p7 = scmp.ge.s32.totalorder %s2353_s19, 2  ;;  %s1973_s7 = sand.u32 1, %s2325_s12  }
 0x2fe   : > { %s1974_s9 = scalar_lea.sflag [#allocation3], %s1973_s7 }
 0x2ff   : > { %p2149_p9 = pnand %p2152_p7, %p2452_p8 }
 0x301   : > { %p2150_p10 = pneg %p2149_p9 }
 0x303   : > { %2320 = dma.done.wait (%p2150_p10), %s1974_s9, 256  }
 0x304   : > { %2322 = vsyncadd (%p2150_p10), %s1974_s9, 4294967040  ;;  %s16_s19 = sadd.s32 1, %s2353_s19   ;;  %s3411_s12 = smov %s2329_s13 }
 0x305   : > { %p13_p11 = scmp.ge.s32.totalorder %s16_s19, 6   ;;  %s3412_s13 = smov %s2333_s14 }
 0x306   : > { %s3413_s14 = smov %s2461_s30  ;;  %s3414_s15 = smov %s2345_s17 }
 0x307   : > { %s3415_s16 = smov %s2349_s18  ;;  %s3416_s17 = smov %s3419_s22 }
 0x308   : > { %s3417_s18 = smov %s3423_s23  ;;  %15 = sbr.rel (!%p13_p11) target bundleno = 5 (0x5), region = 76 }
 0x30d   :  { %1980 = vsyncpa [#allocation3], 1 }
 0x30e   :  { %1982 = vsyncpa [#allocation3 + $0x1], 1 }

</bundles_post_ra>
